<compile_context>
chip_gen: v5e
topology: v5e:2x2
jax: 0.10.0
libtpu: 0.0.40
codegen_flags: <defaults>
</compile_context>

<pallas_src>
import functools

import jax
import jax.numpy as jnp
from jax.experimental import pallas as pl
from jax.experimental.pallas import tpu as pltpu


def _round_up(x, m):
    return (x + m - 1) // m * m


def mlp_kernel(x_ref, w1_ref, b1_ref, w2_ref, b2_ref, w3_ref, b3_ref,
               w4_ref, b4_ref, o_ref):
    # bf16 operands, f32 MXU accumulation, f32 bias adds.
    h = jnp.dot(x_ref[...], w1_ref[...],
                preferred_element_type=jnp.float32) + b1_ref[...]
    h = jnp.dot(h.astype(jnp.bfloat16), w2_ref[...],
                preferred_element_type=jnp.float32) + b2_ref[...]
    h = jnp.dot(h.astype(jnp.bfloat16), w3_ref[...],
                preferred_element_type=jnp.float32) + b3_ref[...]
    o_ref[...] = (jnp.dot(h.astype(jnp.bfloat16), w4_ref[...],
                          preferred_element_type=jnp.float32)
                  + b4_ref[...]).astype(o_ref.dtype)


def nn_forward(x_nchw, params, *, batch_tile=256):
    """x_nchw: (B, C, H, W) float32. params: dict of f32 weights/biases.

    Weights are stored (in, out) = torch_weight.T; biases are (1, out).
    """
    B = x_nchw.shape[0]
    # nn.Flatten(): row-major over (C, H, W). Cast to bf16 for the MXU path.
    x = x_nchw.reshape(B, -1).astype(jnp.bfloat16)
    K1 = x.shape[1]

    w1 = params["w1"].astype(jnp.bfloat16)
    w2 = params["w2"].astype(jnp.bfloat16)
    w3 = params["w3"].astype(jnp.bfloat16)
    w4 = params["w4"].astype(jnp.bfloat16)
    b1 = params["b1"].astype(jnp.float32)
    b2 = params["b2"].astype(jnp.float32)
    b3 = params["b3"].astype(jnp.float32)
    b4 = params["b4"].astype(jnp.float32)
    num_classes = w4.shape[1]

    # Lane-dense output: pad the final N dim to a multiple of 128 (zero cols).
    n_pad = _round_up(max(num_classes, 128), 128)
    w4p = jnp.zeros((w4.shape[0], n_pad), jnp.bfloat16).at[:, :num_classes].set(w4)
    b4p = jnp.zeros((1, n_pad), jnp.float32).at[:, :num_classes].set(b4)

    # Batch tile: multiple of 8 sublanes; up to `batch_tile` rows per MXU pass.
    tb = max(8, min(batch_tile, _round_up(B, 8)))
    b_pad = _round_up(B, tb)
    if b_pad != B:
        x = jnp.pad(x, ((0, b_pad - B), (0, 0)))
    n_tiles = b_pad // tb

    # Cost estimate (scheduling hint for XLA around the custom call).
    weight_elems = K1 * 512 + 512 * 256 + 256 * 128 + 128 * n_pad
    flops = 2 * b_pad * weight_elems
    bytes_weights = 2 * weight_elems                       # bf16
    bytes_bias = 4 * (512 + 256 + 128 + n_pad)             # f32
    bytes_io = 2 * b_pad * K1 + 4 * b_pad * n_pad          # bf16 in, f32 out
    cost = pl.CostEstimate(flops=flops, transcendentals=0,
                           bytes_accessed=bytes_weights + bytes_bias + bytes_io)

    # VMEM budget: resident params + double-buffered x/out tiles + intermediates.
    vmem_est = (bytes_weights + bytes_bias
                + 2 * tb * K1 * 2          # x tiles (bf16, 2 buffers)
                + 2 * tb * n_pad * 4       # out tiles (f32, 2 buffers)
                + tb * (512 + 256 + 128) * 6)  # f32 + bf16 intermediates
    vmem_limit = int(min(max(2 * vmem_est, 32 * 1024 * 1024), 100 * 1024 * 1024))

    const2d = lambda shape: pl.BlockSpec(shape, lambda i: (0, 0))

    out = pl.pallas_call(
        mlp_kernel,
        out_shape=jax.ShapeDtypeStruct((b_pad, n_pad), jnp.float32),
        grid_spec=pltpu.PrefetchScalarGridSpec(
            num_scalar_prefetch=0,
            grid=(n_tiles,),
            in_specs=[
                pl.BlockSpec((tb, K1), lambda i: (i, 0)),   # x: batch-tiled
                const2d(w1.shape), const2d(b1.shape),       # params: resident
                const2d(w2.shape), const2d(b2.shape),
                const2d(w3.shape), const2d(b3.shape),
                const2d(w4p.shape), const2d(b4p.shape),
            ],
            out_specs=pl.BlockSpec((tb, n_pad), lambda i: (i, 0)),
        ),
        compiler_params=pltpu.CompilerParams(
            dimension_semantics=("parallel",),
            vmem_limit_bytes=vmem_limit),
        cost_estimate=cost,
    )(x, w1, b1, w2, b2, w3, b3, w4p, b4p)

    return out[:B, :num_classes]


def init_params(key, input_size, num_classes):
    """Deterministic init mimicking torch.nn.Linear default (uniform +-1/sqrt(fan_in)).
    Weights stored as (in, out) = torch_weight.T; biases as (1, out)."""
    dims = [(input_size, 512), (512, 256), (256, 128), (128, num_classes)]
    params = {}
    for idx, (fan_in, fan_out) in enumerate(dims, start=1):
        key, kw, kb = jax.random.split(key, 3)
        bound = 1.0 / jnp.sqrt(jnp.float32(fan_in))
        params[f"w{idx}"] = jax.random.uniform(
            kw, (fan_in, fan_out), jnp.float32, -bound, bound)
        params[f"b{idx}"] = jax.random.uniform(
            kb, (1, fan_out), jnp.float32, -bound, bound)
    return params


def reference_forward_f32(x_nchw, params):
    """Pure-f32 reference (module semantics)."""
    x = x_nchw.reshape(x_nchw.shape[0], -1)
    h = x @ params["w1"] + params["b1"]
    h = h @ params["w2"] + params["b2"]
    h = h @ params["w3"] + params["b3"]
    return h @ params["w4"] + params["b4"]


def reference_forward_mixed(x_nchw, params):
    """Reference that mirrors the kernel's precision: bf16 matmul operands,
    f32 accumulation, f32 bias adds."""
    bf = lambda a: a.astype(jnp.bfloat16).astype(jnp.float32)
    dot = functools.partial(jnp.dot, precision=jax.lax.Precision.HIGHEST,
                            preferred_element_type=jnp.float32)
    x = bf(x_nchw.reshape(x_nchw.shape[0], -1))
    h = dot(x, bf(params["w1"])) + params["b1"]
    h = dot(bf(h), bf(params["w2"])) + params["b2"]
    h = dot(bf(h), bf(params["w3"])) + params["b3"]
    return dot(bf(h), bf(params["w4"])) + params["b4"]


if __name__ == "__main__":
    # Small shapes consistent with the module: NCHW input with C=4,
    # flattened size C*H*W = 4*16*16 = 1024, num_classes = 2, batch = 2.
    B, C, H, W = 2, 4, 16, 16
    input_size = C * H * W
    num_classes = 2

    key = jax.random.PRNGKey(0)
    key, kx = jax.random.split(key)
    x = jax.random.normal(kx, (B, C, H, W), jnp.float32)
    params = init_params(key, input_size, num_classes)

    logits = jax.block_until_ready(nn_forward(x, params))
    ref_mixed = reference_forward_mixed(x, params)
    ref_f32 = reference_forward_f32(x, params)

    assert logits.shape == (B, num_classes)
    # Tight check vs a reference with identical (bf16-operand / f32-acc) precision.
    assert jnp.allclose(logits, ref_mixed, atol=1e-3, rtol=1e-3)
    # Looser sanity check vs the pure-f32 module semantics.
    assert jnp.allclose(logits, ref_f32, atol=5e-2, rtol=5e-2)
    print("KERNEL_OK")
</pallas_src>

<mosaic_0001>
module attributes {stable_mosaic.version = 11 : i64} {
  func.func @mlp_kernel(%arg0: i32, %arg1: memref<8x1024xbf16, #tpu.memory_space<vmem>>, %arg2: memref<1024x512xbf16, #tpu.memory_space<vmem>>, %arg3: memref<1x512xf32, #tpu.memory_space<vmem>>, %arg4: memref<512x256xbf16, #tpu.memory_space<vmem>>, %arg5: memref<1x256xf32, #tpu.memory_space<vmem>>, %arg6: memref<256x128xbf16, #tpu.memory_space<vmem>>, %arg7: memref<1x128xf32, #tpu.memory_space<vmem>>, %arg8: memref<128x128xbf16, #tpu.memory_space<vmem>>, %arg9: memref<1x128xf32, #tpu.memory_space<vmem>>, %arg10: memref<8x128xf32, #tpu.memory_space<vmem>>) attributes {dimension_semantics = [#tpu.dimension_semantics<parallel>], iteration_bounds = array<i64: 1>, scalar_prefetch = 0 : i64, scratch_operands = 0 : i64, tpu.core_type = #tpu.core_type<tc>, window_params = [{transform_indices = @transform_0, window_bounds = array<i64: 8, 1024>}, {pipeline_mode = #tpu.pipeline_mode<synchronous>, transform_indices = @transform_1, window_bounds = array<i64: 1024, 512>}, {pipeline_mode = #tpu.pipeline_mode<synchronous>, transform_indices = @transform_2, window_bounds = array<i64: 1, 512>}, {pipeline_mode = #tpu.pipeline_mode<synchronous>, transform_indices = @transform_3, window_bounds = array<i64: 512, 256>}, {pipeline_mode = #tpu.pipeline_mode<synchronous>, transform_indices = @transform_4, window_bounds = array<i64: 1, 256>}, {pipeline_mode = #tpu.pipeline_mode<synchronous>, transform_indices = @transform_5, window_bounds = array<i64: 256, 128>}, {pipeline_mode = #tpu.pipeline_mode<synchronous>, transform_indices = @transform_6, window_bounds = array<i64: 1, 128>}, {pipeline_mode = #tpu.pipeline_mode<synchronous>, transform_indices = @transform_7, window_bounds = array<i64: 128, 128>}, {pipeline_mode = #tpu.pipeline_mode<synchronous>, transform_indices = @transform_8, window_bounds = array<i64: 1, 128>}, {transform_indices = @transform_9, window_bounds = array<i64: 8, 128>}]} {
    %c0 = arith.constant 0 : index
    %c0_0 = arith.constant 0 : index
    %0 = vector.load %arg1[%c0, %c0_0] : memref<8x1024xbf16, #tpu.memory_space<vmem>>, vector<8x1024xbf16>
    %c0_1 = arith.constant 0 : index
    %c0_2 = arith.constant 0 : index
    %1 = vector.load %arg2[%c0_1, %c0_2] : memref<1024x512xbf16, #tpu.memory_space<vmem>>, vector<1024x512xbf16>
    %cst = arith.constant dense<0.000000e+00> : vector<8x512xf32>
    %2 = tpu.matmul %0, %1, %cst {dimension_numbers = #tpu.dot_dimension_numbers<[1], [0], [0], [1], [0, 0, 1, 1], [], []>} : vector<8x1024xbf16>, vector<1024x512xbf16>, vector<8x512xf32> -> vector<8x512xf32>
    %c0_3 = arith.constant 0 : index
    %c0_4 = arith.constant 0 : index
    %3 = vector.load %arg3[%c0_3, %c0_4] : memref<1x512xf32, #tpu.memory_space<vmem>>, vector<1x512xf32>
    %4 = vector.broadcast %3 : vector<1x512xf32> to vector<8x512xf32>
    %5 = arith.addf %2, %4 : vector<8x512xf32>
    %6 = arith.truncf %5 : vector<8x512xf32> to vector<8x512xbf16>
    %c0_5 = arith.constant 0 : index
    %c0_6 = arith.constant 0 : index
    %7 = vector.load %arg4[%c0_5, %c0_6] : memref<512x256xbf16, #tpu.memory_space<vmem>>, vector<512x256xbf16>
    %cst_7 = arith.constant dense<0.000000e+00> : vector<8x256xf32>
    %8 = tpu.matmul %6, %7, %cst_7 {dimension_numbers = #tpu.dot_dimension_numbers<[1], [0], [0], [1], [0, 0, 1, 1], [], []>} : vector<8x512xbf16>, vector<512x256xbf16>, vector<8x256xf32> -> vector<8x256xf32>
    %c0_8 = arith.constant 0 : index
    %c0_9 = arith.constant 0 : index
    %9 = vector.load %arg5[%c0_8, %c0_9] : memref<1x256xf32, #tpu.memory_space<vmem>>, vector<1x256xf32>
    %10 = vector.broadcast %9 : vector<1x256xf32> to vector<8x256xf32>
    %11 = arith.addf %8, %10 : vector<8x256xf32>
    %12 = arith.truncf %11 : vector<8x256xf32> to vector<8x256xbf16>
    %c0_10 = arith.constant 0 : index
    %c0_11 = arith.constant 0 : index
    %13 = vector.load %arg6[%c0_10, %c0_11] : memref<256x128xbf16, #tpu.memory_space<vmem>>, vector<256x128xbf16>
    %cst_12 = arith.constant dense<0.000000e+00> : vector<8x128xf32>
    %14 = tpu.matmul %12, %13, %cst_12 {dimension_numbers = #tpu.dot_dimension_numbers<[1], [0], [0], [1], [0, 0, 1, 1], [], []>} : vector<8x256xbf16>, vector<256x128xbf16>, vector<8x128xf32> -> vector<8x128xf32>
    %c0_13 = arith.constant 0 : index
    %c0_14 = arith.constant 0 : index
    %15 = vector.load %arg7[%c0_13, %c0_14] : memref<1x128xf32, #tpu.memory_space<vmem>>, vector<1x128xf32>
    %16 = vector.broadcast %15 : vector<1x128xf32> to vector<8x128xf32>
    %17 = arith.addf %14, %16 : vector<8x128xf32>
    %18 = arith.truncf %17 : vector<8x128xf32> to vector<8x128xbf16>
    %c0_15 = arith.constant 0 : index
    %c0_16 = arith.constant 0 : index
    %19 = vector.load %arg8[%c0_15, %c0_16] : memref<128x128xbf16, #tpu.memory_space<vmem>>, vector<128x128xbf16>
    %cst_17 = arith.constant dense<0.000000e+00> : vector<8x128xf32>
    %20 = tpu.matmul %18, %19, %cst_17 {dimension_numbers = #tpu.dot_dimension_numbers<[1], [0], [0], [1], [0, 0, 1, 1], [], []>} : vector<8x128xbf16>, vector<128x128xbf16>, vector<8x128xf32> -> vector<8x128xf32>
    %c0_18 = arith.constant 0 : index
    %c0_19 = arith.constant 0 : index
    %21 = vector.load %arg9[%c0_18, %c0_19] : memref<1x128xf32, #tpu.memory_space<vmem>>, vector<1x128xf32>
    %22 = vector.broadcast %21 : vector<1x128xf32> to vector<8x128xf32>
    %23 = arith.addf %20, %22 : vector<8x128xf32>
    %c0_20 = arith.constant 0 : index
    %c0_21 = arith.constant 0 : index
    %24 = vector.load %arg10[%c0_20, %c0_21] : memref<8x128xf32, #tpu.memory_space<vmem>>, vector<8x128xf32>
    tpu.vector_store %arg10[%c0_20, %c0_21], %23 {strides = array<i32>} : memref<8x128xf32, #tpu.memory_space<vmem>>, vector<8x128xf32>,
    return
  }
  func.func @transform_0(%arg0: i32) -> (i32, i32) {
    %c0_i32 = arith.constant 0 : i32
    %c0_i32_0 = arith.constant 0 : i32
    return %arg0, %c0_i32 : i32, i32
  }
  func.func @transform_1(%arg0: i32) -> (i32, i32) {
    %c0_i32 = arith.constant 0 : i32
    %c0_i32_0 = arith.constant 0 : i32
    %c0_i32_1 = arith.constant 0 : i32
    return %c0_i32, %c0_i32_0 : i32, i32
  }
  func.func @transform_2(%arg0: i32) -> (i32, i32) {
    %c0_i32 = arith.constant 0 : i32
    %c0_i32_0 = arith.constant 0 : i32
    %c0_i32_1 = arith.constant 0 : i32
    return %c0_i32, %c0_i32_0 : i32, i32
  }
  func.func @transform_3(%arg0: i32) -> (i32, i32) {
    %c0_i32 = arith.constant 0 : i32
    %c0_i32_0 = arith.constant 0 : i32
    %c0_i32_1 = arith.constant 0 : i32
    return %c0_i32, %c0_i32_0 : i32, i32
  }
  func.func @transform_4(%arg0: i32) -> (i32, i32) {
    %c0_i32 = arith.constant 0 : i32
    %c0_i32_0 = arith.constant 0 : i32
    %c0_i32_1 = arith.constant 0 : i32
    return %c0_i32, %c0_i32_0 : i32, i32
  }
  func.func @transform_5(%arg0: i32) -> (i32, i32) {
    %c0_i32 = arith.constant 0 : i32
    %c0_i32_0 = arith.constant 0 : i32
    %c0_i32_1 = arith.constant 0 : i32
    return %c0_i32, %c0_i32_0 : i32, i32
  }
  func.func @transform_6(%arg0: i32) -> (i32, i32) {
    %c0_i32 = arith.constant 0 : i32
    %c0_i32_0 = arith.constant 0 : i32
    %c0_i32_1 = arith.constant 0 : i32
    return %c0_i32, %c0_i32_0 : i32, i32
  }
  func.func @transform_7(%arg0: i32) -> (i32, i32) {
    %c0_i32 = arith.constant 0 : i32
    %c0_i32_0 = arith.constant 0 : i32
    %c0_i32_1 = arith.constant 0 : i32
    return %c0_i32, %c0_i32_0 : i32, i32
  }
  func.func @transform_8(%arg0: i32) -> (i32, i32) {
    %c0_i32 = arith.constant 0 : i32
    %c0_i32_0 = arith.constant 0 : i32
    %c0_i32_1 = arith.constant 0 : i32
    return %c0_i32, %c0_i32_0 : i32, i32
  }
  func.func @transform_9(%arg0: i32) -> (i32, i32) {
    %c0_i32 = arith.constant 0 : i32
    %c0_i32_0 = arith.constant 0 : i32
    return %arg0, %c0_i32 : i32, i32
  }
}

</mosaic_0001>

<bundles_post_ra>
// kernel: tpu_custom_call.1
= control target key start
LH: loop header
LB: loop body
LE: loop exit
PB: predicated region body
PF: predicated region fallthrough
CT: control target
= control target key end

     0   :  { %14 = vsyncpa [#allocation3], 0  ;;  %s4968_s0 = inlined_call_operand.hbm [shape: bf16[8,1024], index: 0, kind: input, shape index: {}]   ;;  %s4969_s1 = inlined_call_operand.hbm [shape: bf16[1024,512], index: 1, kind: input, shape index: {}]   ;;  %s4970_s2 = inlined_call_operand.hbm [shape: f32[1,512], index: 2, kind: input, shape index: {}]   ;;  %s4971_s3 = inlined_call_operand.hbm [shape: bf16[512,256], index: 3, kind: input, shape index: {}]   ;;  %s4972_s4 = inlined_call_operand.vmem [shape: f32[1,256], index: 4, kind: input, shape index: {}]   ;;  %s4973_s5 = inlined_call_operand.hbm [shape: bf16[256,128], index: 5, kind: input, shape index: {}]   ;;  %s4974_s6 = inlined_call_operand.vmem [shape: f32[1,128], index: 6, kind: input, shape index: {}]   ;;  %s4975_s7 = inlined_call_operand.hbm [shape: bf16[128,128], index: 7, kind: input, shape index: {}]   ;;  %s4976_s8 = inlined_call_operand.vmem [shape: f32[1,128], index: 8, kind: input, shape index: {}]   ;;  %s4977_s9 = inlined_call_operand.hbm [shape: f32[8,128], index: 9, kind: output, shape index: {}]  }
   0x1   :  { %15 = vsyncpa [#allocation6], 0 }
   0x2   :  { %16 = vsyncpa [#allocation9], 0 }
   0x3   :  { %17 = vsyncpa [#allocation12], 0  ;;  %s34_s11 = sshll.u32 %s4969_s1, 4  ;;  %s35_s11 = int_to_ptr.hbm [resolvable:$true] %s34_s11 }
   0x4   :  { %18 = vsyncpa [#allocation4], 0  ;;  %s4792_s12 = smov [#allocation5]   ;;  %s58_s16 = sshll.u32 %s4971_s3, 4  ;;  %s59_s16 = int_to_ptr.hbm [resolvable:$true] %s58_s16 }
   0x5   :  { %s36_s13 = sshll.u32 %s4792_s12, 4  ;;  %s4793_s17 = smov 256   ;;  %s37_s13 = int_to_ptr.vmem [resolvable:$true] %s36_s13 }
   0x6   :  { %s4794_s18 = smov 16   ;;  %s4795_s19 = smov [#allocation8]  }
   0x7   :  { %42 = dma.hbm_to_vmem [thread:$0]  %s35_s11, 32768, %s37_s13, [#allocation6], %s4793_s17, %s4793_s17, %s4794_s18  }
   0x8   :  { %s60_s20 = sshll.u32 %s4795_s19, 4  ;;  %s4796_s21 = smov 128   ;;  %s61_s20 = int_to_ptr.vmem [resolvable:$true] %s60_s20 }
   0x9   :  { %s4797_s22 = smov 8   ;;  %s24_s24 = sshll.u32 %s4968_s0, 4  ;;  %s25_s24 = int_to_ptr.hbm [resolvable:$true] %s24_s24 }
   0xa   :  { %66 = dma.hbm_to_vmem [thread:$0]  %s59_s16, 8192, %s61_s20, [#allocation9], %s4796_s21, %s4796_s21, %s4797_s22  }
   0xb   :  { %s4798_s25 = smov [#allocation2]   ;;  %s48_s28 = sshll.u32 %s4970_s2, 4  ;;  %s49_s28 = int_to_ptr.hbm [resolvable:$true] %s48_s28 }
   0xc   :  { %s26_s26 = sshll.u32 %s4798_s25, 4  ;;  %s4799_s29 = smov [#allocation7]   ;;  %s27_s26 = int_to_ptr.vmem [resolvable:$true] %s26_s26 }
   0xd   :  { %29 = dma.hbm_to_vmem [thread:$0]  %s25_s24, 512, %s27_s26, [#allocation3]  }
   0xe   :  { %s50_s30 = sshll.u32 %s4799_s29, 4  ;;  %s73_s12 = sshll.u32 %s4973_s5, 4  ;;  %s51_s30 = int_to_ptr.vmem [resolvable:$true] %s50_s30  ;;  %s74_s12 = int_to_ptr.hbm [resolvable:$true] %s73_s12 }
   0xf   :  { %53 = dma.hbm_to_vmem [thread:$0]  %s49_s28, 64, %s51_s30, [#allocation6]  }
  0x10   :  { %s4800_s0 = smov [#allocation10]   ;;  %s88_s16 = sshll.u32 %s4975_s7, 4  ;;  %s89_s16 = int_to_ptr.hbm [resolvable:$true] %s88_s16 }
  0x11   :  { %s75_s13 = sshll.u32 %s4800_s0, 4  ;;  %s4801_s17 = smov 64   ;;  %s76_s13 = int_to_ptr.vmem [resolvable:$true] %s75_s13 }
  0x12   :  { %s4802_s2 = smov 4   ;;  %s4803_s18 = smov [#allocation11]  }
  0x13   :  { %81 = dma.hbm_to_vmem [thread:$0]  %s74_s12, 2048, %s76_s13, [#allocation9], %s4801_s17, %s4801_s17, %s4802_s2  }
  0x14   :  { %s90_s19 = sshll.u32 %s4803_s18, 4  ;;  %s91_s19 = int_to_ptr.vmem [resolvable:$true] %s90_s19 }
  0x15   :  { %96 = dma.hbm_to_vmem [thread:$0]  %s89_s16, 1024, %s91_s19, [#allocation12], %s4801_s17, %s4801_s17, %s4802_s2  }
  0x16   :  { %4782 = dma.done.wait [#allocation3], 512  }
  0x17   :  { %4783 = vsyncadd [#allocation3], 4294966784 }
  0x18   :  { %4784 = dma.done.wait [#allocation6], 32832  }
  0x19   :  { %4785 = vsyncadd [#allocation6], 4294934464 }
  0x1a   :  { %4786 = dma.done.wait [#allocation9], 10240  }
  0x1b   :  { %4787 = vsyncadd [#allocation9], 4294957056 }
  0x1c   :  { %4788 = dma.done.wait [#allocation12], 1024  }
  0x1d   :  { %4789 = vsyncadd [#allocation12], 4294966272  ;;  %v2992_v0 = vld [vmem:[#allocation5 + $0xe0] sm:$0xf]  ;;  %v4284_v1 = vld [vmem:[#allocation5 + $0xec] sm:$0xf0] }
  0x1e   :  { %v3120_v2 = vld [vmem:[#allocation5 + $0x1e0] sm:$0xf]  ;;  %v2993_v3 = vor.u32 %v4284_v1, %v2992_v0  ;;  %v4316_v4 = vld [vmem:[#allocation5 + $0x1ec] sm:$0xf0]  ;;  %s4804_s1 = smov [#allocation13]   ;;  %s2865_s26 = sshll.u32 %s4977_s9, 4  ;;  %s2866_s26 = int_to_ptr.hbm [resolvable:$true] %s2865_s26 }
  0x1f   :  { %v3248_v5 = vld [vmem:[#allocation5 + $0x2e0] sm:$0xf]  ;;  %v4348_v6 = vld [vmem:[#allocation5 + $0x2ec] sm:$0xf0]  ;;  %v3121_v7 = vor.u32 %v4316_v4, %v3120_v2  ;;  %s2863_s23 = sshll.u32 %s4804_s1, 4  ;;  %s2864_s23 = int_to_ptr.vmem [resolvable:$true] %s2863_s23 }
  0x20   :  { %v3249_v8 = vor.u32 %v4348_v6, %v3248_v5  ;;  %v3376_v9 = vld [vmem:[#allocation5 + $0x3e0] sm:$0xf]  ;;  %v4380_v10 = vld [vmem:[#allocation5 + $0x3ec] sm:$0xf0]  ;;  %1701 = vmatpush.bf16.msra.mxu0 %v2993_v3 }
  0x21   :  { %v2976_v11 = vld [vmem:[#allocation5 + $0xc0] sm:$0xf]  ;;  %v3377_v12 = vor.u32 %v4380_v10, %v3376_v9  ;;  %v4280_v13 = vld [vmem:[#allocation5 + $0xcc] sm:$0xf0]  ;;  %1714 = vmatpush.bf16.msra.mxu1 %v3121_v7 }
  0x22   :  { %v3104_v14 = vld [vmem:[#allocation5 + $0x1c0] sm:$0xf]  ;;  %v4312_v15 = vld [vmem:[#allocation5 + $0x1cc] sm:$0xf0]  ;;  %1727 = vmatpush.bf16.msra.mxu2 %v3249_v8  ;;  %v2977_v16 = vor.u32 %v4280_v13, %v2976_v11 }
  0x23   :  { %v3105_v17 = vor.u32 %v4312_v15, %v3104_v14  ;;  %v3232_v18 = vld [vmem:[#allocation5 + $0x2c0] sm:$0xf]  ;;  %v4344_v19 = vld [vmem:[#allocation5 + $0x2cc] sm:$0xf0]  ;;  %1740 = vmatpush.bf16.msra.mxu3 %v3377_v12 }
  0x24   :  { %v3360_v20 = vld [vmem:[#allocation5 + $0x3c0] sm:$0xf]  ;;  %v3233_v21 = vor.u32 %v4344_v19, %v3232_v18  ;;  %v4376_v22 = vld [vmem:[#allocation5 + $0x3cc] sm:$0xf0]  ;;  %1702 = vmatpush.bf16.msra.mxu0 %v2977_v16 }
  0x25   :  { %v2960_v23 = vld [vmem:[#allocation5 + $0xa0] sm:$0xf]  ;;  %v4276_v24 = vld [vmem:[#allocation5 + $0xac] sm:$0xf0]  ;;  %v3361_v25 = vor.u32 %v4376_v22, %v3360_v20  ;;  %1715 = vmatpush.bf16.msra.mxu1 %v3105_v17 }
  0x26   :  { %v3088_v26 = vld [vmem:[#allocation5 + $0x1a0] sm:$0xf]  ;;  %v4308_v27 = vld [vmem:[#allocation5 + $0x1ac] sm:$0xf0]  ;;  %v2961_v29 = vor.u32 %v4276_v24, %v2960_v23  ;;  %1728 = vmatpush.bf16.msra.mxu2 %v3233_v21 }
  0x27   :  { %v3216_v28 = vld [vmem:[#allocation5 + $0x2a0] sm:$0xf]  ;;  %v4340_v30 = vld [vmem:[#allocation5 + $0x2ac] sm:$0xf0]  ;;  %v3089_v33 = vor.u32 %v4308_v27, %v3088_v26  ;;  %1741 = vmatpush.bf16.msra.mxu3 %v3361_v25 }
  0x28   :  { %v3344_v31 = vld [vmem:[#allocation5 + $0x3a0] sm:$0xf]  ;;  %v4372_v32 = vld [vmem:[#allocation5 + $0x3ac] sm:$0xf0]  ;;  %v3217_v34 = vor.u32 %v4340_v30, %v3216_v28  ;;  %1703 = vmatpush.bf16.msra.mxu0 %v2961_v29 }
  0x29   :  { %v2944_v35 = vld [vmem:[#allocation5 + $0x80] sm:$0xf]  ;;  %v4272_v36 = vld [vmem:[#allocation5 + $0x8c] sm:$0xf0]  ;;  %v3345_v38 = vor.u32 %v4372_v32, %v3344_v31  ;;  %1716 = vmatpush.bf16.msra.mxu1 %v3089_v33 }
  0x2a   :  { %v3072_v37 = vld [vmem:[#allocation5 + $0x180] sm:$0xf]  ;;  %v4304_v39 = vld [vmem:[#allocation5 + $0x18c] sm:$0xf0]  ;;  %v2945_v44 = vor.u32 %v4272_v36, %v2944_v35  ;;  %1729 = vmatpush.bf16.msra.mxu2 %v3217_v34 }
  0x2b   :  { %v3200_v40 = vld [vmem:[#allocation5 + $0x280] sm:$0xf]  ;;  %v4336_v41 = vld [vmem:[#allocation5 + $0x28c] sm:$0xf0]  ;;  %v3073_v45 = vor.u32 %v4304_v39, %v3072_v37  ;;  %1742 = vmatpush.bf16.msra.mxu3 %v3345_v38 }
  0x2c   :  { %v3328_v42 = vld [vmem:[#allocation5 + $0x380] sm:$0xf]  ;;  %v4368_v43 = vld [vmem:[#allocation5 + $0x38c] sm:$0xf0]  ;;  %v3201_v46 = vor.u32 %v4336_v41, %v3200_v40  ;;  %1704 = vmatpush.bf16.msra.mxu0 %v2945_v44 }
  0x2d   :  { %v2928_v47 = vld [vmem:[#allocation5 + $0x60] sm:$0xf]  ;;  %v4268_v48 = vld [vmem:[#allocation5 + $0x6c] sm:$0xf0]  ;;  %v3329_v50 = vor.u32 %v4368_v43, %v3328_v42  ;;  %1717 = vmatpush.bf16.msra.mxu1 %v3073_v45 }
  0x2e   :  { %v3056_v49 = vld [vmem:[#allocation5 + $0x160] sm:$0xf]  ;;  %v4300_v51 = vld [vmem:[#allocation5 + $0x16c] sm:$0xf0]  ;;  %v2929_v56 = vor.u32 %v4268_v48, %v2928_v47  ;;  %1730 = vmatpush.bf16.msra.mxu2 %v3201_v46 }
  0x2f   :  { %v3184_v52 = vld [vmem:[#allocation5 + $0x260] sm:$0xf]  ;;  %v4332_v53 = vld [vmem:[#allocation5 + $0x26c] sm:$0xf0]  ;;  %v3057_v57 = vor.u32 %v4300_v51, %v3056_v49  ;;  %1743 = vmatpush.bf16.msra.mxu3 %v3329_v50 }
  0x30   :  { %v3312_v54 = vld [vmem:[#allocation5 + $0x360] sm:$0xf]  ;;  %v4364_v55 = vld [vmem:[#allocation5 + $0x36c] sm:$0xf0]  ;;  %v3185_v58 = vor.u32 %v4332_v53, %v3184_v52  ;;  %1705 = vmatpush.bf16.msra.mxu0 %v2929_v56 }
  0x31   :  { %v2912_v59 = vld [vmem:[#allocation5 + $0x40] sm:$0xf]  ;;  %v4264_v60 = vld [vmem:[#allocation5 + $0x4c] sm:$0xf0]  ;;  %v3313_v62 = vor.u32 %v4364_v55, %v3312_v54  ;;  %1718 = vmatpush.bf16.msra.mxu1 %v3057_v57 }
  0x32   :  { %v3040_v61 = vld [vmem:[#allocation5 + $0x140] sm:$0xf]  ;;  %v4296_v63 = vld [vmem:[#allocation5 + $0x14c] sm:$0xf0]  ;;  %v2913_v4 = vor.u32 %v4264_v60, %v2912_v59  ;;  %1731 = vmatpush.bf16.msra.mxu2 %v3185_v58 }
  0x33   :  { %v3168_v0 = vld [vmem:[#allocation5 + $0x240] sm:$0xf]  ;;  %v4328_v1 = vld [vmem:[#allocation5 + $0x24c] sm:$0xf0]  ;;  %v3041_v5 = vor.u32 %v4296_v63, %v3040_v61  ;;  %1744 = vmatpush.bf16.msra.mxu3 %v3313_v62 }
  0x34   :  { %v3296_v2 = vld [vmem:[#allocation5 + $0x340] sm:$0xf]  ;;  %v4360_v3 = vld [vmem:[#allocation5 + $0x34c] sm:$0xf0]  ;;  %v3169_v6 = vor.u32 %v4328_v1, %v3168_v0  ;;  %1706 = vmatpush.bf16.msra.mxu0 %v2913_v4 }
  0x35   :  { %v2896_v7 = vld [vmem:[#allocation5 + $0x20] sm:$0xf]  ;;  %v4260_v8 = vld [vmem:[#allocation5 + $0x2c] sm:$0xf0]  ;;  %v3297_v10 = vor.u32 %v4360_v3, %v3296_v2  ;;  %1719 = vmatpush.bf16.msra.mxu1 %v3041_v5  ;;  %v124_v2 = vld [vmem:[#allocation2 + $0x8] sm:$0xff] }
  0x36   :  { %v3024_v9 = vld [vmem:[#allocation5 + $0x120] sm:$0xf]  ;;  %v4292_v11 = vld [vmem:[#allocation5 + $0x12c] sm:$0xf0]  ;;  %v2897_v16 = vor.u32 %v4260_v8, %v2896_v7  ;;  %1732 = vmatpush.bf16.msra.mxu2 %v3169_v6  ;;  %v399_v8 = vunpack.c.l.b16 %v124_v2 }
  0x37   :  { %v3152_v12 = vld [vmem:[#allocation5 + $0x220] sm:$0xf]  ;;  %v4324_v13 = vld [vmem:[#allocation5 + $0x22c] sm:$0xf0]  ;;  %v3025_v19 = vor.u32 %v4292_v11, %v3024_v9  ;;  %1745 = vmatpush.bf16.msra.mxu3 %v3297_v10  ;;  %v400_v10 = vunpack.c.h.b16 %v124_v2 }
  0x38   :  { %v3280_v14 = vld [vmem:[#allocation5 + $0x320] sm:$0xf]  ;;  %v4356_v15 = vld [vmem:[#allocation5 + $0x32c] sm:$0xf0]  ;;  %v3153_v20 = vor.u32 %v4324_v13, %v3152_v12  ;;  %1707 = vmatpush.bf16.msra.mxu0 %v2897_v16 }
  0x39   :  { %v2880_v17 = vld [vmem:[#allocation5] sm:$0xf]  ;;  %v4256_v18 = vld [vmem:[#allocation5 + $0xc] sm:$0xf0]  ;;  %v3281_v24 = vor.u32 %v4356_v15, %v3280_v14  ;;  %1720 = vmatpush.bf16.msra.mxu1 %v3025_v19 }
  0x3a   :  { %v3008_v21 = vld [vmem:[#allocation5 + $0x100] sm:$0xf]  ;;  %v4288_v22 = vld [vmem:[#allocation5 + $0x10c] sm:$0xf0]  ;;  %v2881_v31 = vor.u32 %v4256_v18, %v2880_v17  ;;  %1733 = vmatpush.bf16.msra.mxu2 %v3153_v20  ;;  %v4873_v18 = vpack.c.b16 %v399_v8, %v399_v8  ;;  %v4877_v20 = vpack.c.b16 %v400_v10, %v400_v10  ;;  %v4282_v8 = vld [vmem:[#allocation5 + $0xe4] sm:$0xf] }
  0x3b   :  { %v3136_v23 = vld [vmem:[#allocation5 + $0x200] sm:$0xf]  ;;  %v4320_v25 = vld [vmem:[#allocation5 + $0x20c] sm:$0xf0]  ;;  %v3009_v35 = vor.u32 %v4288_v22, %v3008_v21  ;;  %1746 = vmatpush.bf16.msra.mxu3 %v3281_v24  ;;  %v4314_v10 = vld [vmem:[#allocation5 + $0x1e4] sm:$0xf] }
  0x3c   :  { %v3264_v26 = vld [vmem:[#allocation5 + $0x300] sm:$0xf]  ;;  %v4352_v27 = vld [vmem:[#allocation5 + $0x30c] sm:$0xf0]  ;;  %v3137_v36 = vor.u32 %v4320_v25, %v3136_v23  ;;  %1708 = vmatpush.bf16.msra.mxu0 %v2881_v31 }
  0x3d   :  { %v3504_v28 = vld [vmem:[#allocation5 + $0x4e0] sm:$0xf]  ;;  %v4412_v29 = vld [vmem:[#allocation5 + $0x4ec] sm:$0xf0]  ;;  %v3265_v39 = vor.u32 %v4352_v27, %v3264_v26  ;;  %1721 = vmatpush.bf16.msra.mxu1 %v3009_v35 }
  0x3e   :  { %v3632_v30 = vld [vmem:[#allocation5 + $0x5e0] sm:$0xf]  ;;  %v4444_v32 = vld [vmem:[#allocation5 + $0x5ec] sm:$0xf0]  ;;  %v3505_v40 = vor.u32 %v4412_v29, %v3504_v28  ;;  %1734 = vmatpush.bf16.msra.mxu2 %v3137_v36 }
  0x3f   :  { %v3760_v33 = vld [vmem:[#allocation5 + $0x6e0] sm:$0xf]  ;;  %v4476_v34 = vld [vmem:[#allocation5 + $0x6ec] sm:$0xf0]  ;;  %v3633_v41 = vor.u32 %v4444_v32, %v3632_v30  ;;  %1747 = vmatpush.bf16.msra.mxu3 %v3265_v39 }
  0x40   :  { %v3888_v37 = vld [vmem:[#allocation5 + $0x7e0] sm:$0xf]  ;;  %v4508_v38 = vld [vmem:[#allocation5 + $0x7ec] sm:$0xf0]  ;;  %v3761_v42 = vor.u32 %v4476_v34, %v3760_v33  ;;  %1753 = vmatpush.bf16.msrb.mxu0 %v3505_v40 }
  0x41   :  { %v3488_v43 = vld [vmem:[#allocation5 + $0x4c0] sm:$0xf]  ;;  %v4408_v44 = vld [vmem:[#allocation5 + $0x4cc] sm:$0xf0]  ;;  %v3889_v46 = vor.u32 %v4508_v38, %v3888_v37  ;;  %1766 = vmatpush.bf16.msrb.mxu1 %v3633_v41  ;;  %1735 = vmatmul.bf16.vlgmr.msra.gmra.mxu2 %v4873_v18 }
  0x42   :  { %v3616_v45 = vld [vmem:[#allocation5 + $0x5c0] sm:$0xf]  ;;  %v4440_v47 = vld [vmem:[#allocation5 + $0x5cc] sm:$0xf0]  ;;  %v3489_v52 = vor.u32 %v4408_v44, %v3488_v43  ;;  %1779 = vmatpush.bf16.msrb.mxu2 %v3761_v42  ;;  %1748 = vmatmul.bf16.vlgmr.msra.gmra.mxu3 %v4877_v20 }
  0x43   :  { %v3744_v48 = vld [vmem:[#allocation5 + $0x6c0] sm:$0xf]  ;;  %v4472_v49 = vld [vmem:[#allocation5 + $0x6cc] sm:$0xf0]  ;;  %v3617_v54 = vor.u32 %v4440_v47, %v3616_v45  ;;  %1792 = vmatpush.bf16.msrb.mxu3 %v3889_v46 }
  0x44   :  { %v3872_v50 = vld [vmem:[#allocation5 + $0x7c0] sm:$0xf]  ;;  %v4504_v51 = vld [vmem:[#allocation5 + $0x7cc] sm:$0xf0]  ;;  %v3745_v55 = vor.u32 %v4472_v49, %v3744_v48  ;;  %1754 = vmatpush.bf16.msrb.mxu0 %v3489_v52 }
  0x45   :  { %v3472_v53 = vld [vmem:[#allocation5 + $0x4a0] sm:$0xf]  ;;  %v4404_v56 = vld [vmem:[#allocation5 + $0x4ac] sm:$0xf0]  ;;  %v3873_v59 = vor.u32 %v4504_v51, %v3872_v50  ;;  %1767 = vmatpush.bf16.msrb.mxu1 %v3617_v54 }
  0x46   :  { %v3600_v57 = vld [vmem:[#allocation5 + $0x5a0] sm:$0xf]  ;;  %v4436_v58 = vld [vmem:[#allocation5 + $0x5ac] sm:$0xf0]  ;;  %v3473_v0 = vor.u32 %v4404_v56, %v3472_v53  ;;  %1780 = vmatpush.bf16.msrb.mxu2 %v3745_v55 }
  0x47   :  { %v3728_v60 = vld [vmem:[#allocation5 + $0x6a0] sm:$0xf]  ;;  %v4468_v61 = vld [vmem:[#allocation5 + $0x6ac] sm:$0xf0]  ;;  %v3601_v1 = vor.u32 %v4436_v58, %v3600_v57  ;;  %1793 = vmatpush.bf16.msrb.mxu3 %v3873_v59 }
  0x48   :  { %v3856_v62 = vld [vmem:[#allocation5 + $0x7a0] sm:$0xf]  ;;  %v4500_v63 = vld [vmem:[#allocation5 + $0x7ac] sm:$0xf0]  ;;  %v3729_v4 = vor.u32 %v4468_v61, %v3728_v60  ;;  %1755 = vmatpush.bf16.msrb.mxu0 %v3473_v0 }
  0x49   :  { %v123_v3 = vld [vmem:[#allocation2] sm:$0xff]  ;;  %v4400_v6 = vld [vmem:[#allocation5 + $0x48c] sm:$0xf0]  ;;  %v3857_v11 = vor.u32 %v4500_v63, %v3856_v62  ;;  %1768 = vmatpush.bf16.msrb.mxu1 %v3601_v1 }
  0x4a   :  { %v3456_v5 = vld [vmem:[#allocation5 + $0x480] sm:$0xf]  ;;  %v397_v9 = vunpack.c.l.b16 %v123_v3  ;;  %v4432_v12 = vld [vmem:[#allocation5 + $0x58c] sm:$0xf0]  ;;  %v398_v15 = vunpack.c.h.b16 %v123_v3  ;;  %1781 = vmatpush.bf16.msrb.mxu2 %v3729_v4  ;;  %v126_v3 = vld [vmem:[#allocation2 + $0x18] sm:$0xff] }
  0x4b   :  { %v3584_v7 = vld [vmem:[#allocation5 + $0x580] sm:$0xf]  ;;  %v4464_v14 = vld [vmem:[#allocation5 + $0x68c] sm:$0xf0]  ;;  %v3457_v21 = vor.u32 %v4400_v6, %v3456_v5  ;;  %1794 = vmatpush.bf16.msrb.mxu3 %v3857_v11 }
  0x4c   :  { %v3712_v13 = vld [vmem:[#allocation5 + $0x680] sm:$0xf]  ;;  %v4496_v17 = vld [vmem:[#allocation5 + $0x78c] sm:$0xf0]  ;;  %v4875_v19 = vpack.c.b16 %v397_v9, %v397_v9  ;;  %v4879_v22 = vpack.c.b16 %v398_v15, %v398_v15  ;;  %v3585_v23 = vor.u32 %v4432_v12, %v3584_v7  ;;  %v2994_v9 = vld [vmem:[#allocation5 + $0xf0] sm:$0xf0]  ;;  %v403_v15 = vunpack.c.l.b16 %v126_v3 }
  0x4d   :  { %v3840_v16 = vld [vmem:[#allocation5 + $0x780] sm:$0xf]  ;;  %v3713_v24 = vor.u32 %v4464_v14, %v3712_v13  ;;  %v4396_v26 = vld [vmem:[#allocation5 + $0x46c] sm:$0xf0]  ;;  %1756 = vmatpush.bf16.msrb.mxu0 %v3457_v21  ;;  %v3122_v12 = vld [vmem:[#allocation5 + $0x1f0] sm:$0xf0] }
  0x4e   :  { %v3440_v25 = vld [vmem:[#allocation5 + $0x460] sm:$0xf]  ;;  %v3841_v28 = vor.u32 %v4496_v17, %v3840_v16  ;;  %v4428_v29 = vld [vmem:[#allocation5 + $0x56c] sm:$0xf0]  ;;  %1709 = vmatmul.bf16.vlgmr.msra.gmra.mxu0 %v4875_v19  ;;  %1722 = vmatmul.bf16.vlgmr.msra.gmra.mxu1 %v4879_v22  ;;  %v4346_v13 = vld [vmem:[#allocation5 + $0x2e4] sm:$0xf] }
  0x4f   :  { %v3568_v27 = vld [vmem:[#allocation5 + $0x560] sm:$0xf]  ;;  %v4460_v31 = vld [vmem:[#allocation5 + $0x66c] sm:$0xf0]  ;;  %v3441_v34 = vor.u32 %v4396_v26, %v3440_v25  ;;  %1769 = vmatpush.bf16.msrb.mxu1 %v3585_v23  ;;  %1782 = vmatpush.bf16.msrb.mxu2 %v3713_v24  ;;  %v3250_v14 = vld [vmem:[#allocation5 + $0x2f0] sm:$0xf0]  ;;  %v404_v25 = vunpack.c.h.b16 %v126_v3 }
  0x50   :  { %v3696_v30 = vld [vmem:[#allocation5 + $0x660] sm:$0xf]  ;;  %v4492_v33 = vld [vmem:[#allocation5 + $0x76c] sm:$0xf0]  ;;  %v3569_v35 = vor.u32 %v4428_v29, %v3568_v27  ;;  %1795 = vmatpush.bf16.msrb.mxu3 %v3841_v28  ;;  %v4378_v21 = vld [vmem:[#allocation5 + $0x3e4] sm:$0xf]  ;;  %v2997_v27 = vor.u32 %v4282_v8, %v2994_v9  ;;  %v3125_v29 = vor.u32 %v4314_v10, %v3122_v12 }
  0x51   :  { %v3824_v32 = vld [vmem:[#allocation5 + $0x760] sm:$0xf]  ;;  %v3697_v36 = vor.u32 %v4460_v31, %v3696_v30  ;;  %v4392_v38 = vld [vmem:[#allocation5 + $0x44c] sm:$0xf0]  ;;  %1757 = vmatpush.bf16.msrb.mxu0 %v3441_v34  ;;  %v3378_v23 = vld [vmem:[#allocation5 + $0x3f0] sm:$0xf0]  ;;  %v3253_v30 = vor.u32 %v4346_v13, %v3250_v14 }
  0x52   :  { %v3424_v37 = vld [vmem:[#allocation5 + $0x440] sm:$0xf]  ;;  %v3825_v40 = vor.u32 %v4492_v33, %v3824_v32  ;;  %v4424_v41 = vld [vmem:[#allocation5 + $0x54c] sm:$0xf0]  ;;  %v4278_v31 = vld [vmem:[#allocation5 + $0xc4] sm:$0xf]  ;;  %v3381_v34 = vor.u32 %v4378_v21, %v3378_v23 }
  0x53   :  { %v3552_v39 = vld [vmem:[#allocation5 + $0x540] sm:$0xf]  ;;  %v4456_v43 = vld [vmem:[#allocation5 + $0x64c] sm:$0xf0]  ;;  %v3425_v46 = vor.u32 %v4392_v38, %v3424_v37  ;;  %1770 = vmatpush.bf16.msrb.mxu1 %v3569_v35  ;;  %1783 = vmatpush.bf16.msrb.mxu2 %v3697_v36  ;;  %v2978_v32 = vld [vmem:[#allocation5 + $0xd0] sm:$0xf0]  ;;  %v4885_v38 = vpack.c.b16 %v403_v15, %v403_v15 }
  0x54   :  { %v3680_v42 = vld [vmem:[#allocation5 + $0x640] sm:$0xf]  ;;  %v4488_v45 = vld [vmem:[#allocation5 + $0x74c] sm:$0xf0]  ;;  %v3553_v47 = vor.u32 %v4424_v41, %v3552_v39  ;;  %1796 = vmatpush.bf16.msrb.mxu3 %v3825_v40  ;;  %v4310_v33 = vld [vmem:[#allocation5 + $0x1c4] sm:$0xf] }
  0x55   :  { %v3808_v44 = vld [vmem:[#allocation5 + $0x740] sm:$0xf]  ;;  %v3681_v48 = vor.u32 %v4456_v43, %v3680_v42  ;;  %v4388_v50 = vld [vmem:[#allocation5 + $0x42c] sm:$0xf0]  ;;  %1758 = vmatpush.bf16.msrb.mxu0 %v3425_v46  ;;  %v3106_v35 = vld [vmem:[#allocation5 + $0x1d0] sm:$0xf0]  ;;  %v4889_v42 = vpack.c.b16 %v404_v25, %v404_v25  ;;  %v2981_v43 = vor.u32 %v4278_v31, %v2978_v32 }
  0x56   :  { %v3408_v49 = vld [vmem:[#allocation5 + $0x420] sm:$0xf]  ;;  %v3809_v52 = vor.u32 %v4488_v45, %v3808_v44  ;;  %v4420_v53 = vld [vmem:[#allocation5 + $0x52c] sm:$0xf0]  ;;  %v4342_v36 = vld [vmem:[#allocation5 + $0x2c4] sm:$0xf]  ;;  %v3109_v45 = vor.u32 %v4310_v33, %v3106_v35 }
  0x57   :  { %v3536_v51 = vld [vmem:[#allocation5 + $0x520] sm:$0xf]  ;;  %v4452_v55 = vld [vmem:[#allocation5 + $0x62c] sm:$0xf0]  ;;  %v3409_v59 = vor.u32 %v4388_v50, %v3408_v49  ;;  %1771 = vmatpush.bf16.msrb.mxu1 %v3553_v47  ;;  %1784 = vmatpush.bf16.msrb.mxu2 %v3681_v48  ;;  %v3234_v37 = vld [vmem:[#allocation5 + $0x2d0] sm:$0xf0] }
  0x58   :  { %v3664_v54 = vld [vmem:[#allocation5 + $0x620] sm:$0xf]  ;;  %v4484_v57 = vld [vmem:[#allocation5 + $0x72c] sm:$0xf0]  ;;  %v3537_v63 = vor.u32 %v4420_v53, %v3536_v51  ;;  %1797 = vmatpush.bf16.msrb.mxu3 %v3809_v52  ;;  %v4374_v39 = vld [vmem:[#allocation5 + $0x3c4] sm:$0xf]  ;;  %v3237_v46 = vor.u32 %v4342_v36, %v3234_v37 }
  0x59   :  { %v3792_v56 = vld [vmem:[#allocation5 + $0x720] sm:$0xf]  ;;  %v4384_v60 = vld [vmem:[#allocation5 + $0x40c] sm:$0xf0]  ;;  %v3665_v0 = vor.u32 %v4452_v55, %v3664_v54  ;;  %1759 = vmatpush.bf16.msrb.mxu0 %v3409_v59  ;;  %v3362_v40 = vld [vmem:[#allocation5 + $0x3d0] sm:$0xf0] }
  0x5a   :  { %v3392_v58 = vld [vmem:[#allocation5 + $0x400] sm:$0xf]  ;;  %v4416_v62 = vld [vmem:[#allocation5 + $0x50c] sm:$0xf0]  ;;  %v3793_v4 = vor.u32 %v4484_v57, %v3792_v56  ;;  %v4274_v47 = vld [vmem:[#allocation5 + $0xa4] sm:$0xf]  ;;  %v3365_v50 = vor.u32 %v4374_v39, %v3362_v40 }
  0x5b   :  { %v3520_v61 = vld [vmem:[#allocation5 + $0x500] sm:$0xf]  ;;  %v4448_v2 = vld [vmem:[#allocation5 + $0x60c] sm:$0xf0]  ;;  %v3393_v11 = vor.u32 %v4384_v60, %v3392_v58  ;;  %1772 = vmatpush.bf16.msrb.mxu1 %v3537_v63  ;;  %1785 = vmatpush.bf16.msrb.mxu2 %v3665_v0  ;;  %v2962_v48 = vld [vmem:[#allocation5 + $0xb0] sm:$0xf0] }
  0x5c   :  { %v3648_v1 = vld [vmem:[#allocation5 + $0x600] sm:$0xf]  ;;  %v4480_v6 = vld [vmem:[#allocation5 + $0x70c] sm:$0xf0]  ;;  %v3521_v16 = vor.u32 %v4416_v62, %v3520_v61  ;;  %1798 = vmatpush.bf16.msrb.mxu3 %v3793_v4  ;;  %v4306_v49 = vld [vmem:[#allocation5 + $0x1a4] sm:$0xf]  ;;  %v2965_v56 = vor.u32 %v4274_v47, %v2962_v48 }
  0x5d   :  { %v3776_v5 = vld [vmem:[#allocation5 + $0x700] sm:$0xf]  ;;  %v125_v7 = vld [vmem:[#allocation2 + $0x10] sm:$0xff]  ;;  %v3649_v17 = vor.u32 %v4448_v2, %v3648_v1  ;;  %1760 = vmatpush.bf16.msrb.mxu0 %v3393_v11  ;;  %v4338_v52 = vld [vmem:[#allocation5 + $0x2a4] sm:$0xf] }
  0x5e   :  { %v401_v24 = vunpack.c.l.b16 %v125_v7  ;;  %v3777_v26 = vor.u32 %v4480_v6, %v3776_v5  ;;  %v402_v28 = vunpack.c.h.b16 %v125_v7  ;;  %v3090_v51 = vld [vmem:[#allocation5 + $0x1b0] sm:$0xf0]  ;;  %v4370_v54 = vld [vmem:[#allocation5 + $0x3a4] sm:$0xf] }
  0x5f   :  { %1773 = vmatpush.bf16.msrb.mxu1 %v3521_v16  ;;  %1786 = vmatpush.bf16.msrb.mxu2 %v3649_v17  ;;  %v3218_v53 = vld [vmem:[#allocation5 + $0x2b0] sm:$0xf0]  ;;  %v3093_v57 = vor.u32 %v4306_v49, %v3090_v51  ;;  %v4270_v59 = vld [vmem:[#allocation5 + $0x84] sm:$0xf] }
  0x60   :  { %v4887_v41 = vpack.c.b16 %v401_v24, %v401_v24  ;;  %1799 = vmatpush.bf16.msrb.mxu3 %v3777_v26  ;;  %v4891_v44 = vpack.c.b16 %v402_v28, %v402_v28  ;;  %v3346_v55 = vld [vmem:[#allocation5 + $0x3b0] sm:$0xf0]  ;;  %v3221_v58 = vor.u32 %v4338_v52, %v3218_v53  ;;  %v4302_v61 = vld [vmem:[#allocation5 + $0x184] sm:$0xf] }
  0x61   :  { %1805 = vmatpush.bf16.msra.mxu0 %v2997_v27  ;;  %v2946_v60 = vld [vmem:[#allocation5 + $0x90] sm:$0xf0]  ;;  %v3349_v62 = vor.u32 %v4370_v54, %v3346_v55  ;;  %v4334_v0 = vld [vmem:[#allocation5 + $0x284] sm:$0xf] }
  0x62   :  { %1787 = vmatmul.bf16.vlgmr.msrb.gmra.mxu2 %v4885_v38  ;;  %1761 = vmatmul.bf16.vlgmr.msrb.gmra.mxu0 %v4887_v41  ;;  %v3074_v63 = vld [vmem:[#allocation5 + $0x190] sm:$0xf0]  ;;  %v4366_v2 = vld [vmem:[#allocation5 + $0x384] sm:$0xf]  ;;  %v2949_v4 = vor.u32 %v4270_v59, %v2946_v60 }
  0x63   :  { %1818 = vmatpush.bf16.msra.mxu1 %v3125_v29  ;;  %1831 = vmatpush.bf16.msra.mxu2 %v3253_v30  ;;  %v3202_v1 = vld [vmem:[#allocation5 + $0x290] sm:$0xf0]  ;;  %v3077_v5 = vor.u32 %v4302_v61, %v3074_v63  ;;  %v4266_v7 = vld [vmem:[#allocation5 + $0x64] sm:$0xf] }
  0x64   :  { %1844 = vmatpush.bf16.msra.mxu3 %v3381_v34  ;;  %1774 = vmatmul.bf16.vlgmr.msrb.gmra.mxu1 %v4891_v44  ;;  %v3330_v3 = vld [vmem:[#allocation5 + $0x390] sm:$0xf0]  ;;  %v3205_v6 = vor.u32 %v4334_v0, %v3202_v1  ;;  %v4298_v9 = vld [vmem:[#allocation5 + $0x164] sm:$0xf] }
  0x65   :  { %1800 = vmatmul.bf16.vlgmr.msrb.gmra.mxu3 %v4889_v42  ;;  %1806 = vmatpush.bf16.msra.mxu0 %v2981_v43  ;;  %v2930_v8 = vld [vmem:[#allocation5 + $0x70] sm:$0xf0]  ;;  %v3333_v10 = vor.u32 %v4366_v2, %v3330_v3  ;;  %v4330_v12 = vld [vmem:[#allocation5 + $0x264] sm:$0xf] }
  0x66   :  { %v3058_v11 = vld [vmem:[#allocation5 + $0x170] sm:$0xf0]  ;;  %v4362_v14 = vld [vmem:[#allocation5 + $0x364] sm:$0xf]  ;;  %v2933_v16 = vor.u32 %v4266_v7, %v2930_v8 }
  0x67   :  { %1819 = vmatpush.bf16.msra.mxu1 %v3109_v45  ;;  %1832 = vmatpush.bf16.msra.mxu2 %v3237_v46  ;;  %v3186_v13 = vld [vmem:[#allocation5 + $0x270] sm:$0xf0]  ;;  %v3061_v17 = vor.u32 %v4298_v9, %v3058_v11  ;;  %v4262_v23 = vld [vmem:[#allocation5 + $0x44] sm:$0xf] }
  0x68   :  { %1845 = vmatpush.bf16.msra.mxu3 %v3365_v50  ;;  %v3314_v15 = vld [vmem:[#allocation5 + $0x370] sm:$0xf0]  ;;  %v3189_v21 = vor.u32 %v4330_v12, %v3186_v13  ;;  %v4294_v25 = vld [vmem:[#allocation5 + $0x144] sm:$0xf] }
  0x69   :  { %1807 = vmatpush.bf16.msra.mxu0 %v2965_v56  ;;  %v2914_v24 = vld [vmem:[#allocation5 + $0x50] sm:$0xf0]  ;;  %v3317_v26 = vor.u32 %v4362_v14, %v3314_v15  ;;  %v4326_v28 = vld [vmem:[#allocation5 + $0x244] sm:$0xf] }
  0x6a   :  { %v3042_v27 = vld [vmem:[#allocation5 + $0x150] sm:$0xf0]  ;;  %v4358_v30 = vld [vmem:[#allocation5 + $0x344] sm:$0xf]  ;;  %v2917_v32 = vor.u32 %v4262_v23, %v2914_v24 }
  0x6b   :  { %1820 = vmatpush.bf16.msra.mxu1 %v3093_v57  ;;  %1833 = vmatpush.bf16.msra.mxu2 %v3221_v58  ;;  %v3170_v29 = vld [vmem:[#allocation5 + $0x250] sm:$0xf0]  ;;  %v3045_v33 = vor.u32 %v4294_v25, %v3042_v27  ;;  %v4258_v35 = vld [vmem:[#allocation5 + $0x24] sm:$0xf] }
  0x6c   :  { %1846 = vmatpush.bf16.msra.mxu3 %v3349_v62  ;;  %v3298_v31 = vld [vmem:[#allocation5 + $0x350] sm:$0xf0]  ;;  %v3173_v34 = vor.u32 %v4326_v28, %v3170_v29  ;;  %v4290_v37 = vld [vmem:[#allocation5 + $0x124] sm:$0xf] }
  0x6d   :  { %1808 = vmatpush.bf16.msra.mxu0 %v2949_v4  ;;  %v2898_v36 = vld [vmem:[#allocation5 + $0x30] sm:$0xf0]  ;;  %v3301_v39 = vor.u32 %v4358_v30, %v3298_v31  ;;  %v4322_v43 = vld [vmem:[#allocation5 + $0x224] sm:$0xf] }
  0x6e   :  { %v3026_v40 = vld [vmem:[#allocation5 + $0x130] sm:$0xf0]  ;;  %v4354_v46 = vld [vmem:[#allocation5 + $0x324] sm:$0xf]  ;;  %v2901_v48 = vor.u32 %v4258_v35, %v2898_v36 }
  0x6f   :  { %1821 = vmatpush.bf16.msra.mxu1 %v3077_v5  ;;  %1834 = vmatpush.bf16.msra.mxu2 %v3205_v6  ;;  %v3154_v45 = vld [vmem:[#allocation5 + $0x230] sm:$0xf0]  ;;  %v4254_v49 = vld [vmem:[#allocation5 + $0x4] sm:$0xf]  ;;  %v3029_v51 = vor.u32 %v4290_v37, %v3026_v40 }
  0x70   :  { %1847 = vmatpush.bf16.msra.mxu3 %v3333_v10  ;;  %v3282_v47 = vld [vmem:[#allocation5 + $0x330] sm:$0xf0]  ;;  %v3157_v52 = vor.u32 %v4322_v43, %v3154_v45  ;;  %v4286_v53 = vld [vmem:[#allocation5 + $0x104] sm:$0xf] }
  0x71   :  { %1809 = vmatpush.bf16.msra.mxu0 %v2933_v16  ;;  %v2882_v50 = vld [vmem:[#allocation5 + $0x10] sm:$0xf0]  ;;  %v4318_v55 = vld [vmem:[#allocation5 + $0x204] sm:$0xf]  ;;  %v3285_v56 = vor.u32 %v4354_v46, %v3282_v47 }
  0x72   :  { %v3010_v54 = vld [vmem:[#allocation5 + $0x110] sm:$0xf0]  ;;  %v4350_v58 = vld [vmem:[#allocation5 + $0x304] sm:$0xf]  ;;  %v2885_v63 = vor.u32 %v4254_v49, %v2882_v50 }
  0x73   :  { %1822 = vmatpush.bf16.msra.mxu1 %v3061_v17  ;;  %1835 = vmatpush.bf16.msra.mxu2 %v3189_v21  ;;  %v3138_v57 = vld [vmem:[#allocation5 + $0x210] sm:$0xf0]  ;;  %v4410_v60 = vld [vmem:[#allocation5 + $0x4e4] sm:$0xf]  ;;  %v3013_v3 = vor.u32 %v4286_v53, %v3010_v54 }
  0x74   :  { %1848 = vmatpush.bf16.msra.mxu3 %v3317_v26  ;;  %v3266_v59 = vld [vmem:[#allocation5 + $0x310] sm:$0xf0]  ;;  %v4442_v62 = vld [vmem:[#allocation5 + $0x5e4] sm:$0xf]  ;;  %v3141_v4 = vor.u32 %v4318_v55, %v3138_v57 }
  0x75   :  { %1810 = vmatpush.bf16.msra.mxu0 %v2917_v32  ;;  %v3506_v61 = vld [vmem:[#allocation5 + $0x4f0] sm:$0xf0]  ;;  %v4474_v1 = vld [vmem:[#allocation5 + $0x6e4] sm:$0xf]  ;;  %v3269_v7 = vor.u32 %v4350_v58, %v3266_v59 }
  0x76   :  { %v3634_v0 = vld [vmem:[#allocation5 + $0x5f0] sm:$0xf0]  ;;  %v4506_v5 = vld [vmem:[#allocation5 + $0x7e4] sm:$0xf]  ;;  %v3509_v8 = vor.u32 %v4410_v60, %v3506_v61 }
  0x77   :  { %1823 = vmatpush.bf16.msra.mxu1 %v3045_v33  ;;  %1836 = vmatpush.bf16.msra.mxu2 %v3173_v34  ;;  %v3762_v2 = vld [vmem:[#allocation5 + $0x6f0] sm:$0xf0]  ;;  %v3637_v9 = vor.u32 %v4442_v62, %v3634_v0  ;;  %v4406_v11 = vld [vmem:[#allocation5 + $0x4c4] sm:$0xf] }
  0x78   :  { %1849 = vmatpush.bf16.msra.mxu3 %v3301_v39  ;;  %v3890_v6 = vld [vmem:[#allocation5 + $0x7f0] sm:$0xf0]  ;;  %v3765_v10 = vor.u32 %v4474_v1, %v3762_v2  ;;  %v4438_v13 = vld [vmem:[#allocation5 + $0x5c4] sm:$0xf] }
  0x79   :  { %1811 = vmatpush.bf16.msra.mxu0 %v2901_v48  ;;  %v3490_v12 = vld [vmem:[#allocation5 + $0x4d0] sm:$0xf0]  ;;  %v3893_v14 = vor.u32 %v4506_v5, %v3890_v6  ;;  %v4470_v16 = vld [vmem:[#allocation5 + $0x6c4] sm:$0xf] }
  0x7a   :  { %v3618_v15 = vld [vmem:[#allocation5 + $0x5d0] sm:$0xf0]  ;;  %v4502_v21 = vld [vmem:[#allocation5 + $0x7c4] sm:$0xf]  ;;  %v3493_v24 = vor.u32 %v4406_v11, %v3490_v12 }
  0x7b   :  { %1824 = vmatpush.bf16.msra.mxu1 %v3029_v51  ;;  %1837 = vmatpush.bf16.msra.mxu2 %v3157_v52  ;;  %v3746_v17 = vld [vmem:[#allocation5 + $0x6d0] sm:$0xf0]  ;;  %v3621_v25 = vor.u32 %v4438_v13, %v3618_v15  ;;  %v4402_v27 = vld [vmem:[#allocation5 + $0x4a4] sm:$0xf] }
  0x7c   :  { %1850 = vmatpush.bf16.msra.mxu3 %v3285_v56  ;;  %v3874_v23 = vld [vmem:[#allocation5 + $0x7d0] sm:$0xf0]  ;;  %v3749_v26 = vor.u32 %v4470_v16, %v3746_v17  ;;  %v4434_v29 = vld [vmem:[#allocation5 + $0x5a4] sm:$0xf] }
  0x7d   :  { %1812 = vmatpush.bf16.msra.mxu0 %v2885_v63  ;;  %v3474_v28 = vld [vmem:[#allocation5 + $0x4b0] sm:$0xf0]  ;;  %v3877_v30 = vor.u32 %v4502_v21, %v3874_v23  ;;  %v4466_v32 = vld [vmem:[#allocation5 + $0x6a4] sm:$0xf] }
  0x7e   :  { %v3602_v31 = vld [vmem:[#allocation5 + $0x5b0] sm:$0xf0]  ;;  %v4498_v34 = vld [vmem:[#allocation5 + $0x7a4] sm:$0xf]  ;;  %v3477_v36 = vor.u32 %v4402_v27, %v3474_v28 }
  0x7f   :  { %1825 = vmatpush.bf16.msra.mxu1 %v3013_v3  ;;  %1838 = vmatpush.bf16.msra.mxu2 %v3141_v4  ;;  %v3730_v33 = vld [vmem:[#allocation5 + $0x6b0] sm:$0xf0]  ;;  %v3605_v37 = vor.u32 %v4434_v29, %v3602_v31  ;;  %v4398_v40 = vld [vmem:[#allocation5 + $0x484] sm:$0xf] }
  0x80   :  { %1851 = vmatpush.bf16.msra.mxu3 %v3269_v7  ;;  %v3858_v35 = vld [vmem:[#allocation5 + $0x7b0] sm:$0xf0]  ;;  %1813 = vmatmul.bf16.vlgmr.msra.gmra.mxu0 %v4875_v19  ;;  %v3733_v39 = vor.u32 %v4466_v32, %v3730_v33  ;;  %v4430_v45 = vld [vmem:[#allocation5 + $0x584] sm:$0xf] }
  0x81   :  { %1857 = vmatpush.bf16.msrb.mxu0 %v3509_v8  ;;  %v3458_v43 = vld [vmem:[#allocation5 + $0x490] sm:$0xf0]  ;;  %v3861_v46 = vor.u32 %v4498_v34, %v3858_v35  ;;  %v4462_v48 = vld [vmem:[#allocation5 + $0x684] sm:$0xf] }
  0x82   :  { %1839 = vmatmul.bf16.vlgmr.msra.gmra.mxu2 %v4873_v18  ;;  %1826 = vmatmul.bf16.vlgmr.msra.gmra.mxu1 %v4879_v22  ;;  %v3586_v47 = vld [vmem:[#allocation5 + $0x590] sm:$0xf0]  ;;  %v4494_v50 = vld [vmem:[#allocation5 + $0x784] sm:$0xf]  ;;  %v3461_v52 = vor.u32 %v4398_v40, %v3458_v43  ;;  %v3000_v43 = vld [vmem:[#allocation5 + $0xe8] sm:$0xf] }
  0x83   :  { %1870 = vmatpush.bf16.msrb.mxu1 %v3637_v9  ;;  %1883 = vmatpush.bf16.msrb.mxu2 %v3765_v10  ;;  %v3714_v49 = vld [vmem:[#allocation5 + $0x690] sm:$0xf0]  ;;  %v3589_v53 = vor.u32 %v4430_v45, %v3586_v47  ;;  %v4394_v55 = vld [vmem:[#allocation5 + $0x464] sm:$0xf]  ;;  %v4285_v45 = vld [vmem:[#allocation5 + $0xf4] sm:$0xf0] }
  0x84   :  { %1896 = vmatpush.bf16.msrb.mxu3 %v3893_v14  ;;  %v3842_v51 = vld [vmem:[#allocation5 + $0x790] sm:$0xf0]  ;;  %v3717_v54 = vor.u32 %v4462_v48, %v3714_v49  ;;  %v4426_v57 = vld [vmem:[#allocation5 + $0x564] sm:$0xf]  ;;  %v4317_v48 = vld [vmem:[#allocation5 + $0x1f4] sm:$0xf0] }
  0x85   :  { %1852 = vmatmul.bf16.vlgmr.msra.gmra.mxu3 %v4877_v20  ;;  %1858 = vmatpush.bf16.msrb.mxu0 %v3493_v24  ;;  %v3442_v56 = vld [vmem:[#allocation5 + $0x470] sm:$0xf0]  ;;  %v3845_v58 = vor.u32 %v4494_v50, %v3842_v51  ;;  %v4458_v60 = vld [vmem:[#allocation5 + $0x664] sm:$0xf]  ;;  %v3256_v49 = vld [vmem:[#allocation5 + $0x2e8] sm:$0xf] }
  0x86   :  { %v3570_v59 = vld [vmem:[#allocation5 + $0x570] sm:$0xf0]  ;;  %v4490_v62 = vld [vmem:[#allocation5 + $0x764] sm:$0xf]  ;;  %v3445_v0 = vor.u32 %v4394_v55, %v3442_v56  ;;  %v4349_v50 = vld [vmem:[#allocation5 + $0x2f4] sm:$0xf0]  ;;  %v3001_v56 = vor.u32 %v4285_v45, %v3000_v43 }
  0x87   :  { %1871 = vmatpush.bf16.msrb.mxu1 %v3621_v25  ;;  %1884 = vmatpush.bf16.msrb.mxu2 %v3749_v26  ;;  %v3698_v61 = vld [vmem:[#allocation5 + $0x670] sm:$0xf0]  ;;  %v3573_v1 = vor.u32 %v4426_v57, %v3570_v59  ;;  %v4390_v3 = vld [vmem:[#allocation5 + $0x444] sm:$0xf]  ;;  %v2984_v59 = vld [vmem:[#allocation5 + $0xc8] sm:$0xf] }
  0x88   :  { %1897 = vmatpush.bf16.msrb.mxu3 %v3877_v30  ;;  %v3826_v63 = vld [vmem:[#allocation5 + $0x770] sm:$0xf0]  ;;  %v3701_v2 = vor.u32 %v4458_v60, %v3698_v61  ;;  %v4422_v5 = vld [vmem:[#allocation5 + $0x544] sm:$0xf]  ;;  %v4281_v60 = vld [vmem:[#allocation5 + $0xd4] sm:$0xf0] }
  0x89   :  { %1859 = vmatpush.bf16.msrb.mxu0 %v3477_v36  ;;  %v3426_v4 = vld [vmem:[#allocation5 + $0x450] sm:$0xf0]  ;;  %v3829_v6 = vor.u32 %v4490_v62, %v3826_v63  ;;  %v4454_v8 = vld [vmem:[#allocation5 + $0x644] sm:$0xf]  ;;  %v3112_v61 = vld [vmem:[#allocation5 + $0x1c8] sm:$0xf] }
  0x8a   :  { %v3554_v7 = vld [vmem:[#allocation5 + $0x550] sm:$0xf0]  ;;  %v4486_v10 = vld [vmem:[#allocation5 + $0x744] sm:$0xf]  ;;  %v3429_v12 = vor.u32 %v4390_v3, %v3426_v4  ;;  %v4313_v63 = vld [vmem:[#allocation5 + $0x1d4] sm:$0xf0]  ;;  %v2985_v4 = vor.u32 %v4281_v60, %v2984_v59 }
  0x8b   :  { %1872 = vmatpush.bf16.msrb.mxu1 %v3605_v37  ;;  %1885 = vmatpush.bf16.msrb.mxu2 %v3733_v39  ;;  %v3682_v9 = vld [vmem:[#allocation5 + $0x650] sm:$0xf0]  ;;  %v3557_v13 = vor.u32 %v4422_v5, %v3554_v7  ;;  %v4386_v15 = vld [vmem:[#allocation5 + $0x424] sm:$0xf]  ;;  %v4377_v3 = vld [vmem:[#allocation5 + $0x3d4] sm:$0xf0]  ;;  %v3113_v5 = vor.u32 %v4313_v63, %v3112_v61 }
  0x8c   :  { %1898 = vmatpush.bf16.msrb.mxu3 %v3861_v46  ;;  %v3810_v11 = vld [vmem:[#allocation5 + $0x750] sm:$0xf0]  ;;  %v3685_v14 = vor.u32 %v4454_v8, %v3682_v9  ;;  %v4418_v17 = vld [vmem:[#allocation5 + $0x524] sm:$0xf]  ;;  %v3128_v46 = vld [vmem:[#allocation5 + $0x1e8] sm:$0xf] }
  0x8d   :  { %1860 = vmatpush.bf16.msrb.mxu0 %v3461_v52  ;;  %v3410_v16 = vld [vmem:[#allocation5 + $0x430] sm:$0xf0]  ;;  %v3813_v21 = vor.u32 %v4486_v10, %v3810_v11  ;;  %v4450_v24 = vld [vmem:[#allocation5 + $0x624] sm:$0xf]  ;;  %v3129_v57 = vor.u32 %v4317_v48, %v3128_v46  ;;  %v2968_v7 = vld [vmem:[#allocation5 + $0xa8] sm:$0xf] }
  0x8e   :  { %v3538_v23 = vld [vmem:[#allocation5 + $0x530] sm:$0xf0]  ;;  %v4482_v26 = vld [vmem:[#allocation5 + $0x724] sm:$0xf]  ;;  %v3413_v28 = vor.u32 %v4386_v15, %v3410_v16  ;;  %v4277_v8 = vld [vmem:[#allocation5 + $0xb4] sm:$0xf0] }
  0x8f   :  { %1873 = vmatpush.bf16.msrb.mxu1 %v3589_v53  ;;  %1886 = vmatpush.bf16.msrb.mxu2 %v3717_v54  ;;  %v3666_v25 = vld [vmem:[#allocation5 + $0x630] sm:$0xf0]  ;;  %v4382_v29 = vld [vmem:[#allocation5 + $0x404] sm:$0xf]  ;;  %v3541_v31 = vor.u32 %v4418_v17, %v3538_v23  ;;  %v3384_v53 = vld [vmem:[#allocation5 + $0x3e8] sm:$0xf]  ;;  %v2969_v16 = vor.u32 %v4277_v8, %v2968_v7 }
  0x90   :  { %1899 = vmatpush.bf16.msrb.mxu3 %v3845_v58  ;;  %v3794_v27 = vld [vmem:[#allocation5 + $0x730] sm:$0xf0]  ;;  %v3669_v32 = vor.u32 %v4450_v24, %v3666_v25  ;;  %v4414_v33 = vld [vmem:[#allocation5 + $0x504] sm:$0xf]  ;;  %v4381_v54 = vld [vmem:[#allocation5 + $0x3f4] sm:$0xf0]  ;;  %v3257_v58 = vor.u32 %v4349_v50, %v3256_v49 }
  0x91   :  { %1861 = vmatpush.bf16.msrb.mxu0 %v3445_v0  ;;  %v3394_v30 = vld [vmem:[#allocation5 + $0x410] sm:$0xf0]  ;;  %v4446_v35 = vld [vmem:[#allocation5 + $0x604] sm:$0xf]  ;;  %v3797_v36 = vor.u32 %v4482_v26, %v3794_v27  ;;  %v3385_v62 = vor.u32 %v4381_v54, %v3384_v53  ;;  %v3240_v0 = vld [vmem:[#allocation5 + $0x2c8] sm:$0xf] }
  0x92   :  { %v3522_v34 = vld [vmem:[#allocation5 + $0x510] sm:$0xf0]  ;;  %v4478_v39 = vld [vmem:[#allocation5 + $0x704] sm:$0xf]  ;;  %v3397_v47 = vor.u32 %v4382_v29, %v3394_v30  ;;  %v3096_v9 = vld [vmem:[#allocation5 + $0x1a8] sm:$0xf] }
  0x93   :  { %1874 = vmatpush.bf16.msrb.mxu1 %v3573_v1  ;;  %1887 = vmatpush.bf16.msrb.mxu2 %v3701_v2  ;;  %v3650_v37 = vld [vmem:[#allocation5 + $0x610] sm:$0xf0]  ;;  %v3525_v51 = vor.u32 %v4414_v33, %v3522_v34  ;;  %v4345_v1 = vld [vmem:[#allocation5 + $0x2d4] sm:$0xf0]  ;;  %v3368_v2 = vld [vmem:[#allocation5 + $0x3c8] sm:$0xf] }
  0x94   :  { %1900 = vmatpush.bf16.msrb.mxu3 %v3829_v6  ;;  %v3778_v40 = vld [vmem:[#allocation5 + $0x710] sm:$0xf0]  ;;  %v3653_v52 = vor.u32 %v4446_v35, %v3650_v37  ;;  %v3241_v6 = vor.u32 %v4345_v1, %v3240_v0  ;;  %v3369_v10 = vor.u32 %v4377_v3, %v3368_v2  ;;  %v4309_v11 = vld [vmem:[#allocation5 + $0x1b4] sm:$0xf0]  ;;  %v2952_v23 = vld [vmem:[#allocation5 + $0x88] sm:$0xf] }
  0x95   :  { %1862 = vmatpush.bf16.msrb.mxu0 %v3429_v12  ;;  %v3781_v55 = vor.u32 %v4478_v39, %v3778_v40  ;;  %v3224_v12 = vld [vmem:[#allocation5 + $0x2a8] sm:$0xf]  ;;  %v4373_v15 = vld [vmem:[#allocation5 + $0x3b4] sm:$0xf0]  ;;  %v3097_v17 = vor.u32 %v4309_v11, %v3096_v9 }
  0x96   :  { %v4273_v24 = vld [vmem:[#allocation5 + $0x94] sm:$0xf0]  ;;  %v3080_v25 = vld [vmem:[#allocation5 + $0x188] sm:$0xf] }
  0x97   :  { %1875 = vmatpush.bf16.msrb.mxu1 %v3557_v13  ;;  %1888 = vmatpush.bf16.msrb.mxu2 %v3685_v14  ;;  %v4341_v13 = vld [vmem:[#allocation5 + $0x2b4] sm:$0xf0]  ;;  %v3352_v14 = vld [vmem:[#allocation5 + $0x3a8] sm:$0xf] }
  0x98   :  { %1901 = vmatpush.bf16.msrb.mxu3 %v3813_v21  ;;  %v3225_v21 = vor.u32 %v4341_v13, %v3224_v12  ;;  %v3353_v26 = vor.u32 %v4373_v15, %v3352_v14  ;;  %v4305_v27 = vld [vmem:[#allocation5 + $0x194] sm:$0xf0]  ;;  %v3336_v30 = vld [vmem:[#allocation5 + $0x388] sm:$0xf] }
  0x99   :  { %1863 = vmatpush.bf16.msrb.mxu0 %v3413_v28  ;;  %v3208_v28 = vld [vmem:[#allocation5 + $0x288] sm:$0xf]  ;;  %v4337_v29 = vld [vmem:[#allocation5 + $0x294] sm:$0xf0]  ;;  %v3081_v33 = vor.u32 %v4305_v27, %v3080_v25 }
  0x9a   :  { %v3209_v34 = vor.u32 %v4337_v29, %v3208_v28  ;;  %v2936_v35 = vld [vmem:[#allocation5 + $0x68] sm:$0xf]  ;;  %v4301_v40 = vld [vmem:[#allocation5 + $0x174] sm:$0xf0] }
  0x9b   :  { %1876 = vmatpush.bf16.msrb.mxu1 %v3541_v31  ;;  %1889 = vmatpush.bf16.msrb.mxu2 %v3669_v32  ;;  %v4369_v31 = vld [vmem:[#allocation5 + $0x394] sm:$0xf0]  ;;  %v2953_v32 = vor.u32 %v4273_v24, %v2952_v23  ;;  %v3064_v37 = vld [vmem:[#allocation5 + $0x168] sm:$0xf] }
  0x9c   :  { %1902 = vmatpush.bf16.msrb.mxu3 %v3797_v36  ;;  %v4269_v36 = vld [vmem:[#allocation5 + $0x74] sm:$0xf0]  ;;  %v3337_v39 = vor.u32 %v4369_v31, %v3336_v30  ;;  %v3192_v43 = vld [vmem:[#allocation5 + $0x268] sm:$0xf]  ;;  %v3065_v49 = vor.u32 %v4301_v40, %v3064_v37 }
  0x9d   :  { %1864 = vmatpush.bf16.msrb.mxu0 %v3397_v47  ;;  %v4333_v45 = vld [vmem:[#allocation5 + $0x274] sm:$0xf0]  ;;  %v3320_v46 = vld [vmem:[#allocation5 + $0x368] sm:$0xf]  ;;  %v2937_v48 = vor.u32 %v4269_v36, %v2936_v35 }
  0x9e   :  { %v4365_v47 = vld [vmem:[#allocation5 + $0x374] sm:$0xf0]  ;;  %v3193_v50 = vor.u32 %v4333_v45, %v3192_v43  ;;  %v3048_v53 = vld [vmem:[#allocation5 + $0x148] sm:$0xf] }
  0x9f   :  { %1877 = vmatpush.bf16.msrb.mxu1 %v3525_v51  ;;  %1890 = vmatpush.bf16.msrb.mxu2 %v3653_v52  ;;  %v2920_v51 = vld [vmem:[#allocation5 + $0x48] sm:$0xf]  ;;  %v4265_v52 = vld [vmem:[#allocation5 + $0x54] sm:$0xf0]  ;;  %v3321_v54 = vor.u32 %v4365_v47, %v3320_v46 }
  0xa0   :  { %1903 = vmatpush.bf16.msrb.mxu3 %v3781_v55  ;;  %1865 = vmatmul.bf16.vlgmr.msrb.gmra.mxu0 %v4887_v41  ;;  %v4297_v55 = vld [vmem:[#allocation5 + $0x154] sm:$0xf0]  ;;  %v2921_v60 = vor.u32 %v4265_v52, %v2920_v51  ;;  %v2904_v63 = vld [vmem:[#allocation5 + $0x28] sm:$0xf] }
  0xa1   :  { %1909 = vmatpush.bf16.msra.mxu0 %v3001_v56  ;;  %v3176_v56 = vld [vmem:[#allocation5 + $0x248] sm:$0xf]  ;;  %v4361_v59 = vld [vmem:[#allocation5 + $0x354] sm:$0xf0]  ;;  %v3049_v61 = vor.u32 %v4297_v55, %v3048_v53 }
  0xa2   :  { %1891 = vmatmul.bf16.vlgmr.msrb.gmra.mxu2 %v4885_v38  ;;  %1878 = vmatmul.bf16.vlgmr.msrb.gmra.mxu1 %v4891_v44  ;;  %v4261_v0 = vld [vmem:[#allocation5 + $0x34] sm:$0xf0]  ;;  %v3032_v1 = vld [vmem:[#allocation5 + $0x128] sm:$0xf] }
  0xa3   :  { %1922 = vmatpush.bf16.msra.mxu1 %v3129_v57  ;;  %1935 = vmatpush.bf16.msra.mxu2 %v3257_v58  ;;  %v4329_v57 = vld [vmem:[#allocation5 + $0x254] sm:$0xf0]  ;;  %v3304_v58 = vld [vmem:[#allocation5 + $0x348] sm:$0xf]  ;;  %v2905_v8 = vor.u32 %v4261_v0, %v2904_v63 }
  0xa4   :  { %1948 = vmatpush.bf16.msra.mxu3 %v3385_v62  ;;  %v3177_v62 = vor.u32 %v4329_v57, %v3176_v56  ;;  %v3305_v2 = vor.u32 %v4361_v59, %v3304_v58  ;;  %v4293_v3 = vld [vmem:[#allocation5 + $0x134] sm:$0xf0]  ;;  %v2888_v9 = vld [vmem:[#allocation5 + $0x8] sm:$0xf] }
  0xa5   :  { %1904 = vmatmul.bf16.vlgmr.msrb.gmra.mxu3 %v4889_v42  ;;  %1910 = vmatpush.bf16.msra.mxu0 %v2985_v4  ;;  %v3160_v4 = vld [vmem:[#allocation5 + $0x228] sm:$0xf]  ;;  %v4357_v7 = vld [vmem:[#allocation5 + $0x334] sm:$0xf0]  ;;  %v3033_v11 = vor.u32 %v4293_v3, %v3032_v1 }
  0xa6   :  { %v3016_v13 = vld [vmem:[#allocation5 + $0x108] sm:$0xf]  ;;  %v4289_v14 = vld [vmem:[#allocation5 + $0x114] sm:$0xf0] }
  0xa7   :  { %1923 = vmatpush.bf16.msra.mxu1 %v3113_v5  ;;  %1936 = vmatpush.bf16.msra.mxu2 %v3241_v6  ;;  %v4325_v5 = vld [vmem:[#allocation5 + $0x234] sm:$0xf0]  ;;  %v3288_v6 = vld [vmem:[#allocation5 + $0x328] sm:$0xf]  ;;  %v3017_v31 = vor.u32 %v4289_v14, %v3016_v13 }
  0xa8   :  { %1949 = vmatpush.bf16.msra.mxu3 %v3369_v10  ;;  %v4257_v10 = vld [vmem:[#allocation5 + $0x14] sm:$0xf0]  ;;  %v3161_v12 = vor.u32 %v4325_v5, %v3160_v4  ;;  %v3144_v15 = vld [vmem:[#allocation5 + $0x208] sm:$0xf] }
  0xa9   :  { %1911 = vmatpush.bf16.msra.mxu0 %v2969_v16  ;;  %v3289_v16 = vor.u32 %v4357_v7, %v3288_v6  ;;  %v4353_v23 = vld [vmem:[#allocation5 + $0x314] sm:$0xf0]  ;;  %v3512_v24 = vld [vmem:[#allocation5 + $0x4e8] sm:$0xf]  ;;  %v2889_v27 = vor.u32 %v4257_v10, %v2888_v9 }
  0xaa   :  { %v4413_v25 = vld [vmem:[#allocation5 + $0x4f4] sm:$0xf0]  ;;  %v3768_v29 = vld [vmem:[#allocation5 + $0x6e8] sm:$0xf] }
  0xab   :  { %1924 = vmatpush.bf16.msra.mxu1 %v3097_v17  ;;  %1937 = vmatpush.bf16.msra.mxu2 %v3225_v21  ;;  %v4321_v17 = vld [vmem:[#allocation5 + $0x214] sm:$0xf0]  ;;  %v3272_v21 = vld [vmem:[#allocation5 + $0x308] sm:$0xf]  ;;  %v3513_v36 = vor.u32 %v4413_v25, %v3512_v24 }
  0xac   :  { %1950 = vmatpush.bf16.msra.mxu3 %v3353_v26  ;;  %v3640_v26 = vld [vmem:[#allocation5 + $0x5e8] sm:$0xf]  ;;  %v4445_v28 = vld [vmem:[#allocation5 + $0x5f4] sm:$0xf0]  ;;  %v3273_v35 = vor.u32 %v4353_v23, %v3272_v21 }
  0xad   :  { %1912 = vmatpush.bf16.msra.mxu0 %v2953_v32  ;;  %v4477_v30 = vld [vmem:[#allocation5 + $0x6f4] sm:$0xf0]  ;;  %v3145_v32 = vor.u32 %v4321_v17, %v3144_v15  ;;  %v3641_v37 = vor.u32 %v4445_v28, %v3640_v26  ;;  %v3496_v40 = vld [vmem:[#allocation5 + $0x4c8] sm:$0xf]  ;;  %v4909_v26 = vld [vmem:[#allocation7] sm:$0xf] }
  0xae   :  { %v4409_v43 = vld [vmem:[#allocation5 + $0x4d4] sm:$0xf0]  ;;  %v3624_v45 = vld [vmem:[#allocation5 + $0x5c8] sm:$0xf] }
  0xaf   :  { %1925 = vmatpush.bf16.msra.mxu1 %v3081_v33  ;;  %1938 = vmatpush.bf16.msra.mxu2 %v3209_v34  ;;  %v3896_v33 = vld [vmem:[#allocation5 + $0x7e8] sm:$0xf]  ;;  %v4509_v34 = vld [vmem:[#allocation5 + $0x7f4] sm:$0xf0]  ;;  %v3497_v52 = vor.u32 %v4409_v43, %v3496_v40 }
  0xb0   :  { %1951 = vmatpush.bf16.msra.mxu3 %v3337_v39  ;;  %v3769_v39 = vor.u32 %v4477_v30, %v3768_v29  ;;  %v3897_v46 = vor.u32 %v4509_v34, %v3896_v33  ;;  %v4441_v47 = vld [vmem:[#allocation5 + $0x5d4] sm:$0xf0]  ;;  %v3480_v55 = vld [vmem:[#allocation5 + $0x4a8] sm:$0xf] }
  0xb1   :  { %1913 = vmatpush.bf16.msra.mxu0 %v2937_v48  ;;  %v3752_v48 = vld [vmem:[#allocation5 + $0x6c8] sm:$0xf]  ;;  %v4505_v51 = vld [vmem:[#allocation5 + $0x7d4] sm:$0xf0]  ;;  %v3625_v53 = vor.u32 %v4441_v47, %v3624_v45 }
  0xb2   :  { %v4405_v56 = vld [vmem:[#allocation5 + $0x4b4] sm:$0xf0]  ;;  %v3608_v57 = vld [vmem:[#allocation5 + $0x5a8] sm:$0xf] }
  0xb3   :  { %1926 = vmatpush.bf16.msra.mxu1 %v3065_v49  ;;  %1939 = vmatpush.bf16.msra.mxu2 %v3193_v50  ;;  %v4473_v49 = vld [vmem:[#allocation5 + $0x6d4] sm:$0xf0]  ;;  %v3880_v50 = vld [vmem:[#allocation5 + $0x7c8] sm:$0xf]  ;;  %v3481_v0 = vor.u32 %v4405_v56, %v3480_v55 }
  0xb4   :  { %1952 = vmatpush.bf16.msra.mxu3 %v3321_v54  ;;  %v3753_v54 = vor.u32 %v4473_v49, %v3752_v48  ;;  %v3881_v58 = vor.u32 %v4505_v51, %v3880_v50  ;;  %v4437_v59 = vld [vmem:[#allocation5 + $0x5b4] sm:$0xf0]  ;;  %v3464_v3 = vld [vmem:[#allocation5 + $0x488] sm:$0xf] }
  0xb5   :  { %1914 = vmatpush.bf16.msra.mxu0 %v2921_v60  ;;  %v3736_v60 = vld [vmem:[#allocation5 + $0x6a8] sm:$0xf]  ;;  %v4501_v63 = vld [vmem:[#allocation5 + $0x7b4] sm:$0xf0]  ;;  %v3609_v1 = vor.u32 %v4437_v59, %v3608_v57 }
  0xb6   :  { %v4401_v4 = vld [vmem:[#allocation5 + $0x494] sm:$0xf0]  ;;  %v3592_v5 = vld [vmem:[#allocation5 + $0x588] sm:$0xf] }
  0xb7   :  { %1927 = vmatpush.bf16.msra.mxu1 %v3049_v61  ;;  %1940 = vmatpush.bf16.msra.mxu2 %v3177_v62  ;;  %v4469_v61 = vld [vmem:[#allocation5 + $0x6b4] sm:$0xf0]  ;;  %v3864_v62 = vld [vmem:[#allocation5 + $0x7a8] sm:$0xf] }
  0xb8   :  { %1953 = vmatpush.bf16.msra.mxu3 %v3305_v2  ;;  %v3737_v2 = vor.u32 %v4469_v61, %v3736_v60  ;;  %v3865_v6 = vor.u32 %v4501_v63, %v3864_v62  ;;  %v4433_v7 = vld [vmem:[#allocation5 + $0x594] sm:$0xf0]  ;;  %v3848_v10 = vld [vmem:[#allocation5 + $0x788] sm:$0xf] }
  0xb9   :  { %1915 = vmatpush.bf16.msra.mxu0 %v2905_v8  ;;  %v3720_v8 = vld [vmem:[#allocation5 + $0x688] sm:$0xf]  ;;  %v4465_v9 = vld [vmem:[#allocation5 + $0x694] sm:$0xf0]  ;;  %v3593_v14 = vor.u32 %v4433_v7, %v3592_v5 }
  0xba   :  { %v3448_v13 = vld [vmem:[#allocation5 + $0x468] sm:$0xf]  ;;  %v3721_v15 = vor.u32 %v4465_v9, %v3720_v8  ;;  %v4429_v21 = vld [vmem:[#allocation5 + $0x574] sm:$0xf0] }
  0xbb   :  { %1928 = vmatpush.bf16.msra.mxu1 %v3033_v11  ;;  %1941 = vmatpush.bf16.msra.mxu2 %v3161_v12  ;;  %v4497_v11 = vld [vmem:[#allocation5 + $0x794] sm:$0xf0]  ;;  %v3465_v12 = vor.u32 %v4401_v4, %v3464_v3  ;;  %v3576_v17 = vld [vmem:[#allocation5 + $0x568] sm:$0xf] }
  0xbc   :  { %1954 = vmatpush.bf16.msra.mxu3 %v3289_v16  ;;  %v4397_v16 = vld [vmem:[#allocation5 + $0x474] sm:$0xf0]  ;;  %v3849_v23 = vor.u32 %v4497_v11, %v3848_v10  ;;  %v3704_v24 = vld [vmem:[#allocation5 + $0x668] sm:$0xf] }
  0xbd   :  { %1916 = vmatpush.bf16.msra.mxu0 %v2889_v27  ;;  %v4461_v25 = vld [vmem:[#allocation5 + $0x674] sm:$0xf0]  ;;  %v3832_v27 = vld [vmem:[#allocation5 + $0x768] sm:$0xf]  ;;  %v3449_v29 = vor.u32 %v4397_v16, %v3448_v13  ;;  %v4283_v13 = vld [vmem:[#allocation5 + $0xec] sm:$0xf] }
  0xbe   :  { %v4493_v28 = vld [vmem:[#allocation5 + $0x774] sm:$0xf0]  ;;  %v3432_v30 = vld [vmem:[#allocation5 + $0x448] sm:$0xf] }
  0xbf   :  { %1929 = vmatpush.bf16.msra.mxu1 %v3017_v31  ;;  %1942 = vmatpush.bf16.msra.mxu2 %v3145_v32  ;;  %v3577_v31 = vor.u32 %v4429_v21, %v3576_v17  ;;  %v3705_v32 = vor.u32 %v4461_v25, %v3704_v24  ;;  %v4393_v33 = vld [vmem:[#allocation5 + $0x454] sm:$0xf0]  ;;  %v3560_v34 = vld [vmem:[#allocation5 + $0x548] sm:$0xf]  ;;  %v3130_v17 = vld [vmem:[#allocation5 + $0x1f8] sm:$0xf0] }
  0xc0   :  { %1955 = vmatpush.bf16.msra.mxu3 %v3273_v35  ;;  %1917 = vmatmul.bf16.vlgmr.msra.gmra.mxu0 %v4875_v19  ;;  %v385_v35 = vperm.slane %v4909_v26, 0  ;;  %v4457_v40 = vld [vmem:[#allocation5 + $0x654] sm:$0xf0]  ;;  %v3816_v43 = vld [vmem:[#allocation5 + $0x748] sm:$0xf] }
  0xc1   :  { %1961 = vmatpush.bf16.msrb.mxu0 %v3513_v36  ;;  %v3833_v36 = vor.u32 %v4493_v28, %v3832_v27  ;;  %v4489_v45 = vld [vmem:[#allocation5 + $0x754] sm:$0xf0]  ;;  %v3416_v50 = vld [vmem:[#allocation5 + $0x428] sm:$0xf]  ;;  %v4347_v21 = vld [vmem:[#allocation5 + $0x2ec] sm:$0xf] }
  0xc2   :  { %1943 = vmatmul.bf16.vlgmr.msra.gmra.mxu2 %v4873_v18  ;;  %1930 = vmatmul.bf16.vlgmr.msra.gmra.mxu1 %v4879_v22  ;;  %v4389_v51 = vld [vmem:[#allocation5 + $0x434] sm:$0xf0]  ;;  %v3817_v55 = vor.u32 %v4489_v45, %v3816_v43  ;;  %v3672_v57 = vld [vmem:[#allocation5 + $0x628] sm:$0xf]  ;;  %v3114_v43 = vld [vmem:[#allocation5 + $0x1d8] sm:$0xf0] }
  0xc3   :  { %1974 = vmatpush.bf16.msrb.mxu1 %v3641_v37  ;;  %1987 = vmatpush.bf16.msrb.mxu2 %v3769_v39  ;;  %v4425_v37 = vld [vmem:[#allocation5 + $0x554] sm:$0xf0]  ;;  %v3688_v39 = vld [vmem:[#allocation5 + $0x648] sm:$0xf]  ;;  %v3417_v62 = vor.u32 %v4389_v51, %v3416_v50  ;;  %v4343_v45 = vld [vmem:[#allocation5 + $0x2cc] sm:$0xf] }
  0xc4   :  { %2000 = vmatpush.bf16.msrb.mxu3 %v3897_v46  ;;  %v3433_v46 = vor.u32 %v4393_v33, %v3432_v30  ;;  %v3561_v48 = vor.u32 %v4425_v37, %v3560_v34  ;;  %v3689_v49 = vor.u32 %v4457_v40, %v3688_v39  ;;  %v4421_v56 = vld [vmem:[#allocation5 + $0x534] sm:$0xf0]  ;;  %v3800_v59 = vld [vmem:[#allocation5 + $0x728] sm:$0xf]  ;;  %v3386_v30 = vld [vmem:[#allocation5 + $0x3f8] sm:$0xf0] }
  0xc5   :  { %1956 = vmatmul.bf16.vlgmr.msra.gmra.mxu3 %v4877_v20  ;;  %1962 = vmatpush.bf16.msrb.mxu0 %v3497_v52  ;;  %v3544_v52 = vld [vmem:[#allocation5 + $0x528] sm:$0xf]  ;;  %v4485_v60 = vld [vmem:[#allocation5 + $0x734] sm:$0xf0]  ;;  %v2986_v37 = vld [vmem:[#allocation5 + $0xd8] sm:$0xf0] }
  0xc6   :  { %v3400_v63 = vld [vmem:[#allocation5 + $0x408] sm:$0xf]  ;;  %v4417_v4 = vld [vmem:[#allocation5 + $0x514] sm:$0xf0]  ;;  %v3801_v7 = vor.u32 %v4485_v60, %v3800_v59  ;;  %v4311_v39 = vld [vmem:[#allocation5 + $0x1cc] sm:$0xf] }
  0xc7   :  { %1975 = vmatpush.bf16.msrb.mxu1 %v3625_v53  ;;  %1988 = vmatpush.bf16.msrb.mxu2 %v3753_v54  ;;  %v3528_v3 = vld [vmem:[#allocation5 + $0x508] sm:$0xf]  ;;  %v4449_v8 = vld [vmem:[#allocation5 + $0x614] sm:$0xf0]  ;;  %v4339_v59 = vld [vmem:[#allocation5 + $0x2ac] sm:$0xf] }
  0xc8   :  { %2001 = vmatpush.bf16.msrb.mxu3 %v3881_v58  ;;  %v4453_v58 = vld [vmem:[#allocation5 + $0x634] sm:$0xf0]  ;;  %v3656_v5 = vld [vmem:[#allocation5 + $0x608] sm:$0xf]  ;;  %v3529_v27 = vor.u32 %v4417_v4, %v3528_v3  ;;  %v3226_v60 = vld [vmem:[#allocation5 + $0x2b8] sm:$0xf0] }
  0xc9   :  { %1963 = vmatpush.bf16.msrb.mxu0 %v3481_v0  ;;  %v4385_v0 = vld [vmem:[#allocation5 + $0x414] sm:$0xf0]  ;;  %v3784_v9 = vld [vmem:[#allocation5 + $0x708] sm:$0xf]  ;;  %v3657_v28 = vor.u32 %v4449_v8, %v3656_v5  ;;  %v2954_v3 = vld [vmem:[#allocation5 + $0x98] sm:$0xf0] }
  0xca   :  { %v4481_v10 = vld [vmem:[#allocation5 + $0x714] sm:$0xf0]  ;;  %v3401_v16 = vor.u32 %v4385_v0, %v3400_v63  ;;  %v4303_v4 = vld [vmem:[#allocation5 + $0x18c] sm:$0xf]  ;;  %v3210_v8 = vld [vmem:[#allocation5 + $0x298] sm:$0xf0] }
  0xcb   :  { %1976 = vmatpush.bf16.msrb.mxu1 %v3609_v1  ;;  %1989 = vmatpush.bf16.msrb.mxu2 %v3737_v2  ;;  %v1710_v47 = vpop.f32.mrf.mxu0  ;;  %v1723_v54 = vpop.f32.mrf.mxu1  ;;  %v3545_v1 = vor.u32 %v4421_v56, %v3544_v52  ;;  %v3673_v2 = vor.u32 %v4453_v58, %v3672_v57  ;;  %v3117_v52 = vor.u32 %v4311_v39, %v3114_v43  ;;  %v4307_v56 = vld [vmem:[#allocation5 + $0x1ac] sm:$0xf]  ;;  %v3098_v58 = vld [vmem:[#allocation5 + $0x1b8] sm:$0xf0] }
  0xcc   :  { %2002 = vmatpush.bf16.msrb.mxu3 %v3865_v6  ;;  %v1711_v53 = vadd.f32 %v1710_v47, %v385_v35  ;;  %v1736_v6 = vpop.f32.mrf.mxu2  ;;  %v4375_v47 = vld [vmem:[#allocation5 + $0x3cc] sm:$0xf]  ;;  %v3101_v0 = vor.u32 %v4307_v56, %v3098_v58  ;;  %v3050_v43 = vld [vmem:[#allocation5 + $0x158] sm:$0xf0] }
  0xcd   :  { %1964 = vmatpush.bf16.msrb.mxu0 %v3465_v12  ;;  %v1749_v12 = vpop.f32.mrf.mxu3  ;;  %v4295_v39 = vld [vmem:[#allocation5 + $0x14c] sm:$0xf] }
  0xce   :  { %v1724_v61 = vadd.f32 %v1723_v54, %v1711_v53  ;;  %v4275_v54 = vld [vmem:[#allocation5 + $0xac] sm:$0xf] }
  0xcf   :  { %1977 = vmatpush.bf16.msrb.mxu1 %v3593_v14  ;;  %1990 = vmatpush.bf16.msrb.mxu2 %v3721_v15  ;;  %v3002_v14 = vld [vmem:[#allocation5 + $0xf8] sm:$0xf0]  ;;  %v4315_v15 = vld [vmem:[#allocation5 + $0x1ec] sm:$0xf] }
  0xd0   :  { %2003 = vmatpush.bf16.msrb.mxu3 %v3849_v23  ;;  %v1737_v11 = vadd.f32 %v1736_v6, %v1724_v61  ;;  %v3258_v23 = vld [vmem:[#allocation5 + $0x2f8] sm:$0xf0]  ;;  %v3005_v33 = vor.u32 %v4283_v13, %v3002_v14  ;;  %v3133_v34 = vor.u32 %v4315_v15, %v3130_v17  ;;  %v4371_v61 = vld [vmem:[#allocation5 + $0x3ac] sm:$0xf] }
  0xd1   :  { %1965 = vmatpush.bf16.msrb.mxu0 %v3449_v29  ;;  %v4379_v29 = vld [vmem:[#allocation5 + $0x3ec] sm:$0xf]  ;;  %v3261_v35 = vor.u32 %v4347_v21, %v3258_v23  ;;  %v3082_v6 = vld [vmem:[#allocation5 + $0x198] sm:$0xf0] }
  0xd2   :  { %v4912_v24 = vadd.f32 %v1749_v12, %v1737_v11  ;;  %v3389_v40 = vor.u32 %v4379_v29, %v3386_v30  ;;  %v3085_v13 = vor.u32 %v4303_v4, %v3082_v6  ;;  %v4267_v15 = vld [vmem:[#allocation5 + $0x6c] sm:$0xf]  ;;  %v3194_v29 = vld [vmem:[#allocation5 + $0x278] sm:$0xf0] }
  0xd3   :  { %1978 = vmatpush.bf16.msrb.mxu1 %v3577_v31  ;;  %1991 = vmatpush.bf16.msrb.mxu2 %v3705_v32  ;;  %v1712_v25 = vpop.f32.mrf.mxu0  ;;  %v1725_v31 = vpop.f32.mrf.mxu1  ;;  %v3785_v32 = vor.u32 %v4481_v10, %v3784_v9  ;;  %v4367_v9 = vld [vmem:[#allocation5 + $0x38c] sm:$0xf]  ;;  %v3338_v10 = vld [vmem:[#allocation5 + $0x398] sm:$0xf0] }
  0xd4   :  { %2004 = vmatpush.bf16.msrb.mxu3 %v3833_v36  ;;  %v4279_v36 = vld [vmem:[#allocation5 + $0xcc] sm:$0xf]  ;;  %v3341_v25 = vor.u32 %v4367_v9, %v3338_v10  ;;  %v3322_v31 = vld [vmem:[#allocation5 + $0x378] sm:$0xf0] }
  0xd5   :  { %1966 = vmatpush.bf16.msrb.mxu0 %v3433_v46  ;;  %v3242_v46 = vld [vmem:[#allocation5 + $0x2d8] sm:$0xf0]  ;;  %v2989_v50 = vor.u32 %v4279_v36, %v2986_v37  ;;  %v1751_v51 = vpop.f32.mrf.mxu3  ;;  %v4299_v17 = vld [vmem:[#allocation5 + $0x16c] sm:$0xf] }
  0xd6   :  { %v3245_v53 = vor.u32 %v4343_v45, %v3242_v46  ;;  %v4363_v30 = vld [vmem:[#allocation5 + $0x36c] sm:$0xf]  ;;  %v2922_v37 = vld [vmem:[#allocation5 + $0x58] sm:$0xf0] }
  0xd7   :  { %1979 = vmatpush.bf16.msrb.mxu1 %v3561_v48  ;;  %1992 = vmatpush.bf16.msrb.mxu2 %v3689_v49  ;;  %v3370_v48 = vld [vmem:[#allocation5 + $0x3d8] sm:$0xf0]  ;;  %v1738_v49 = vpop.f32.mrf.mxu2  ;;  %v4263_v36 = vld [vmem:[#allocation5 + $0x4c] sm:$0xf] }
  0xd8   :  { %2005 = vmatpush.bf16.msrb.mxu3 %v3817_v55  ;;  %v2970_v55 = vld [vmem:[#allocation5 + $0xb8] sm:$0xf0]  ;;  %v3373_v57 = vor.u32 %v4375_v47, %v3370_v48  ;;  %v4327_v45 = vld [vmem:[#allocation5 + $0x24c] sm:$0xf]  ;;  %v2925_v51 = vor.u32 %v4263_v36, %v2922_v37 }
  0xd9   :  { %1967 = vmatpush.bf16.msrb.mxu0 %v3417_v62  ;;  %v3354_v62 = vld [vmem:[#allocation5 + $0x3b8] sm:$0xf0]  ;;  %v2973_v63 = vor.u32 %v4275_v54, %v2970_v55  ;;  %v4359_v49 = vld [vmem:[#allocation5 + $0x34c] sm:$0xf]  ;;  %v3053_v54 = vor.u32 %v4295_v39, %v3050_v43 }
  0xda   :  { %v3357_v5 = vor.u32 %v4371_v61, %v3354_v62  ;;  %v3178_v46 = vld [vmem:[#allocation5 + $0x258] sm:$0xf0]  ;;  %v4259_v56 = vld [vmem:[#allocation5 + $0x2c] sm:$0xf] }
  0xdb   :  { %1980 = vmatpush.bf16.msrb.mxu1 %v3545_v1  ;;  %1993 = vmatpush.bf16.msrb.mxu2 %v3673_v2  ;;  %v3229_v1 = vor.u32 %v4339_v59, %v3226_v60  ;;  %v4271_v2 = vld [vmem:[#allocation5 + $0x8c] sm:$0xf]  ;;  %v3181_v55 = vor.u32 %v4327_v45, %v3178_v46  ;;  %v3034_v61 = vld [vmem:[#allocation5 + $0x138] sm:$0xf0] }
  0xdc   :  { %2006 = vmatpush.bf16.msrb.mxu3 %v3801_v7  ;;  %v4335_v7 = vld [vmem:[#allocation5 + $0x28c] sm:$0xf]  ;;  %v2957_v11 = vor.u32 %v4271_v2, %v2954_v3  ;;  %v2890_v4 = vld [vmem:[#allocation5 + $0x18] sm:$0xf0] }
  0xdd   :  { %1968 = vmatpush.bf16.msrb.mxu0 %v3401_v16  ;;  %v3213_v14 = vor.u32 %v4335_v7, %v3210_v8  ;;  %v2938_v16 = vld [vmem:[#allocation5 + $0x78] sm:$0xf0]  ;;  %v4291_v58 = vld [vmem:[#allocation5 + $0x12c] sm:$0xf] }
  0xde   :  { %v4323_v62 = vld [vmem:[#allocation5 + $0x22c] sm:$0xf]  ;;  %v3018_v8 = vld [vmem:[#allocation5 + $0x118] sm:$0xf0] }
  0xdf   :  { %1981 = vmatpush.bf16.msrb.mxu1 %v3529_v27  ;;  %1994 = vmatpush.bf16.msrb.mxu2 %v3657_v28  ;;  %v1762_v12 = vpop.f32.mrf.mxu0  ;;  %v3066_v27 = vld [vmem:[#allocation5 + $0x178] sm:$0xf0]  ;;  %v4331_v28 = vld [vmem:[#allocation5 + $0x26c] sm:$0xf] }
  0xe0   :  { %2007 = vmatpush.bf16.msrb.mxu3 %v3785_v32  ;;  %1969 = vmatmul.bf16.vlgmr.msrb.gmra.mxu0 %v4887_v41  ;;  %v1763_v21 = vadd.f32 %v1762_v12, %v4912_v24  ;;  %v3325_v24 = vor.u32 %v4363_v30, %v3322_v31  ;;  %v4255_v3 = vld [vmem:[#allocation5 + $0xc] sm:$0xf]  ;;  %v3146_v12 = vld [vmem:[#allocation5 + $0x218] sm:$0xf0] }
  0xe1   :  { %2013 = vmatpush.bf16.msra.mxu0 %v3005_v33  ;;  %v1775_v23 = vpop.f32.mrf.mxu1  ;;  %v2941_v33 = vor.u32 %v4267_v15, %v2938_v16  ;;  %v4287_v7 = vld [vmem:[#allocation5 + $0x10c] sm:$0xf]  ;;  %v3498_v39 = vld [vmem:[#allocation5 + $0x4d8] sm:$0xf0] }
  0xe2   :  { %1995 = vmatmul.bf16.vlgmr.msrb.gmra.mxu2 %v4885_v38  ;;  %1982 = vmatmul.bf16.vlgmr.msrb.gmra.mxu1 %v4891_v44  ;;  %v1776_v32 = vadd.f32 %v1775_v23, %v1763_v21  ;;  %v4319_v9 = vld [vmem:[#allocation5 + $0x20c] sm:$0xf]  ;;  %v2893_v23 = vor.u32 %v4255_v3, %v2890_v4  ;;  %v3626_v43 = vld [vmem:[#allocation5 + $0x5d8] sm:$0xf0] }
  0xe3   :  { %2026 = vmatpush.bf16.msra.mxu1 %v3133_v34  ;;  %2039 = vmatpush.bf16.msra.mxu2 %v3261_v35  ;;  %v3069_v34 = vor.u32 %v4299_v17, %v3066_v27  ;;  %v3197_v35 = vor.u32 %v4331_v28, %v3194_v29  ;;  %v4411_v16 = vld [vmem:[#allocation5 + $0x4ec] sm:$0xf]  ;;  %v3514_v17 = vld [vmem:[#allocation5 + $0x4f8] sm:$0xf0]  ;;  %v3021_v29 = vor.u32 %v4287_v7, %v3018_v8 }
  0xe4   :  { %2052 = vmatpush.bf16.msra.mxu3 %v3389_v40  ;;  %v4443_v21 = vld [vmem:[#allocation5 + $0x5ec] sm:$0xf]  ;;  %v3770_v28 = vld [vmem:[#allocation5 + $0x6f8] sm:$0xf0]  ;;  %v3149_v30 = vor.u32 %v4319_v9, %v3146_v12 }
  0xe5   :  { %2008 = vmatmul.bf16.vlgmr.msrb.gmra.mxu3 %v4889_v42  ;;  %2014 = vmatpush.bf16.msra.mxu0 %v2989_v50  ;;  %v1788_v40 = vpop.f32.mrf.mxu2  ;;  %v3306_v50 = vld [vmem:[#allocation5 + $0x358] sm:$0xf0]  ;;  %v4475_v27 = vld [vmem:[#allocation5 + $0x6ec] sm:$0xf] }
  0xe6   :  { %v1789_v47 = vadd.f32 %v1788_v40, %v1776_v32  ;;  %v3309_v60 = vor.u32 %v4359_v49, %v3306_v50  ;;  %v4507_v31 = vld [vmem:[#allocation5 + $0x7ec] sm:$0xf]  ;;  %v3898_v32 = vld [vmem:[#allocation5 + $0x7f8] sm:$0xf0]  ;;  %v3773_v36 = vor.u32 %v4475_v27, %v3770_v28 }
  0xe7   :  { %2027 = vmatpush.bf16.msra.mxu1 %v3117_v52  ;;  %2040 = vmatpush.bf16.msra.mxu2 %v3245_v53  ;;  %v1764_v53 = vpop.f32.mrf.mxu0  ;;  %v4407_v37 = vld [vmem:[#allocation5 + $0x4cc] sm:$0xf]  ;;  %v3754_v46 = vld [vmem:[#allocation5 + $0x6d8] sm:$0xf0] }
  0xe8   :  { %2053 = vmatpush.bf16.msra.mxu3 %v3373_v57  ;;  %v1801_v48 = vpop.f32.mrf.mxu3  ;;  %v2906_v57 = vld [vmem:[#allocation5 + $0x38] sm:$0xf0]  ;;  %v4439_v40 = vld [vmem:[#allocation5 + $0x5cc] sm:$0xf]  ;;  %v3501_v49 = vor.u32 %v4407_v37, %v3498_v39 }
  0xe9   :  { %2015 = vmatpush.bf16.msra.mxu0 %v2973_v63  ;;  %v4919_v52 = vadd.f32 %v1801_v48, %v1789_v47  ;;  %v1777_v59 = vpop.f32.mrf.mxu1  ;;  %v3162_v63 = vld [vmem:[#allocation5 + $0x238] sm:$0xf0]  ;;  %v2909_v2 = vor.u32 %v4259_v56, %v2906_v57  ;;  %v4471_v45 = vld [vmem:[#allocation5 + $0x6cc] sm:$0xf]  ;;  %v3629_v50 = vor.u32 %v4439_v40, %v3626_v43 }
  0xea   :  { %v3165_v6 = vor.u32 %v4323_v62, %v3162_v63  ;;  %v4503_v47 = vld [vmem:[#allocation5 + $0x7cc] sm:$0xf]  ;;  %v3882_v48 = vld [vmem:[#allocation5 + $0x7d8] sm:$0xf0] }
  0xeb   :  { %2028 = vmatpush.bf16.msra.mxu1 %v3101_v0  ;;  %2041 = vmatpush.bf16.msra.mxu2 %v3229_v1  ;;  %v4355_v0 = vld [vmem:[#allocation5 + $0x32c] sm:$0xf]  ;;  %v3290_v1 = vld [vmem:[#allocation5 + $0x338] sm:$0xf0]  ;;  %v3885_v56 = vor.u32 %v4503_v47, %v3882_v48 }
  0xec   :  { %2054 = vmatpush.bf16.msra.mxu3 %v3357_v5  ;;  %v3037_v5 = vor.u32 %v4291_v58, %v3034_v61  ;;  %v4403_v53 = vld [vmem:[#allocation5 + $0x4ac] sm:$0xf]  ;;  %v3610_v57 = vld [vmem:[#allocation5 + $0x5b8] sm:$0xf0] }
  0xed   :  { %2016 = vmatpush.bf16.msra.mxu0 %v2957_v11  ;;  %v1790_v10 = vpop.f32.mrf.mxu2  ;;  %v3293_v11 = vor.u32 %v4355_v0, %v3290_v1  ;;  %v4467_v58 = vld [vmem:[#allocation5 + $0x6ac] sm:$0xf]  ;;  %v3738_v59 = vld [vmem:[#allocation5 + $0x6b8] sm:$0xf0] }
  0xee   :  { %v3866_v61 = vld [vmem:[#allocation5 + $0x7b8] sm:$0xf0]  ;;  %v3741_v0 = vor.u32 %v4467_v58, %v3738_v59  ;;  %v4399_v1 = vld [vmem:[#allocation5 + $0x48c] sm:$0xf] }
  0xef   :  { %2029 = vmatpush.bf16.msra.mxu1 %v3085_v13  ;;  %2042 = vmatpush.bf16.msra.mxu2 %v3213_v14  ;;  %v4351_v13 = vld [vmem:[#allocation5 + $0x30c] sm:$0xf]  ;;  %v3274_v14 = vld [vmem:[#allocation5 + $0x318] sm:$0xf0] }
  0xf0   :  { %2055 = vmatpush.bf16.msra.mxu3 %v3341_v25  ;;  %v1803_v15 = vpop.f32.mrf.mxu3  ;;  %v3642_v25 = vld [vmem:[#allocation5 + $0x5f8] sm:$0xf0]  ;;  %v4495_v7 = vld [vmem:[#allocation5 + $0x78c] sm:$0xf] }
  0xf1   :  { %2017 = vmatpush.bf16.msra.mxu0 %v2941_v33  ;;  %v3277_v33 = vor.u32 %v4351_v13, %v3274_v14  ;;  %v3594_v4 = vld [vmem:[#allocation5 + $0x598] sm:$0xf0]  ;;  %v4395_v10 = vld [vmem:[#allocation5 + $0x46c] sm:$0xf] }
  0xf2   :  { %v4427_v12 = vld [vmem:[#allocation5 + $0x56c] sm:$0xf]  ;;  %v3578_v15 = vld [vmem:[#allocation5 + $0x578] sm:$0xf0] }
  0xf3   :  { %2030 = vmatpush.bf16.msra.mxu1 %v3069_v34  ;;  %2043 = vmatpush.bf16.msra.mxu2 %v3197_v35  ;;  %v3517_v34 = vor.u32 %v4411_v16, %v3514_v17  ;;  %v3645_v35 = vor.u32 %v4443_v21, %v3642_v25  ;;  %v4459_v16 = vld [vmem:[#allocation5 + $0x66c] sm:$0xf]  ;;  %v3706_v17 = vld [vmem:[#allocation5 + $0x678] sm:$0xf0]  ;;  %v3581_v27 = vor.u32 %v4427_v12, %v3578_v15 }
  0xf4   :  { %2056 = vmatpush.bf16.msra.mxu3 %v3325_v24  ;;  %v3901_v24 = vor.u32 %v4507_v31, %v3898_v32  ;;  %v4491_v21 = vld [vmem:[#allocation5 + $0x76c] sm:$0xf]  ;;  %v3709_v28 = vor.u32 %v4459_v16, %v3706_v17  ;;  %v3818_v40 = vld [vmem:[#allocation5 + $0x758] sm:$0xf0] }
  0xf5   :  { %2018 = vmatpush.bf16.msra.mxu0 %v2925_v51  ;;  %v3757_v51 = vor.u32 %v4471_v45, %v3754_v46  ;;  %v4423_v31 = vld [vmem:[#allocation5 + $0x54c] sm:$0xf]  ;;  %v3418_v48 = vld [vmem:[#allocation5 + $0x438] sm:$0xf0] }
  0xf6   :  { %v4487_v39 = vld [vmem:[#allocation5 + $0x74c] sm:$0xf] }
  0xf7   :  { %2031 = vmatpush.bf16.msra.mxu1 %v3053_v54  ;;  %2044 = vmatpush.bf16.msra.mxu2 %v3181_v55  ;;  %v3482_v54 = vld [vmem:[#allocation5 + $0x4b8] sm:$0xf0]  ;;  %v4435_v55 = vld [vmem:[#allocation5 + $0x5ac] sm:$0xf] }
  0xf8   :  { %2057 = vmatpush.bf16.msra.mxu3 %v3309_v60  ;;  %v4499_v60 = vld [vmem:[#allocation5 + $0x7ac] sm:$0xf]  ;;  %v3485_v62 = vor.u32 %v4403_v53, %v3482_v54  ;;  %v3613_v63 = vor.u32 %v4435_v55, %v3610_v57  ;;  %v3546_v53 = vld [vmem:[#allocation5 + $0x538] sm:$0xf0] }
  0xf9   :  { %2019 = vmatpush.bf16.msra.mxu0 %v2909_v2  ;;  %v3466_v2 = vld [vmem:[#allocation5 + $0x498] sm:$0xf0]  ;;  %v3869_v3 = vor.u32 %v4499_v60, %v3866_v61  ;;  %v4387_v47 = vld [vmem:[#allocation5 + $0x42c] sm:$0xf] }
  0xfa   :  { %v4451_v54 = vld [vmem:[#allocation5 + $0x62c] sm:$0xf]  ;;  %v3674_v55 = vld [vmem:[#allocation5 + $0x638] sm:$0xf0]  ;;  %v3421_v58 = vor.u32 %v4387_v47, %v3418_v48  ;;  %v3928_v48 = vld [vmem:[#allocation8 + $0x30] sm:$0xf] }
  0xfb   :  { %2032 = vmatpush.bf16.msra.mxu1 %v3037_v5  ;;  %2045 = vmatpush.bf16.msra.mxu2 %v3165_v6  ;;  %v4463_v5 = vld [vmem:[#allocation5 + $0x68c] sm:$0xf]  ;;  %v3722_v6 = vld [vmem:[#allocation5 + $0x698] sm:$0xf0] }
  0xfc   :  { %2058 = vmatpush.bf16.msra.mxu3 %v3293_v11  ;;  %v3725_v9 = vor.u32 %v4463_v5, %v3722_v6  ;;  %v3450_v11 = vld [vmem:[#allocation5 + $0x478] sm:$0xf0]  ;;  %v4383_v59 = vld [vmem:[#allocation5 + $0x40c] sm:$0xf]  ;;  %v386_v5 = vperm.slane %v4909_v26, 1 }
  0xfd   :  { %2020 = vmatpush.bf16.msra.mxu0 %v2893_v23  ;;  %v4925_v8 = vpop.f32.mrf.mxu0  ;;  %v3834_v23 = vld [vmem:[#allocation5 + $0x778] sm:$0xf0]  ;;  %v3453_v25 = vor.u32 %v4395_v10, %v3450_v11  ;;  %v4523_v26 = vld [vmem:[#allocation8 + $0x64] sm:$0xf0] }
  0xfe   :  { %v3802_v57 = vld [vmem:[#allocation5 + $0x738] sm:$0xf0]  ;;  %v1815_v16 = vadd.f32 %v4925_v8, %v386_v5  ;;  %v4008_v8 = vld [vmem:[#allocation8 + $0xd0] sm:$0xf]  ;;  %v4555_v47 = vld [vmem:[#allocation8 + $0x164] sm:$0xf0] }
  0xff   :  { %2033 = vmatpush.bf16.msra.mxu1 %v3021_v29  ;;  %2046 = vmatpush.bf16.msra.mxu2 %v3149_v30  ;;  %v4927_v13 = vpop.f32.mrf.mxu1  ;;  %v4391_v29 = vld [vmem:[#allocation5 + $0x44c] sm:$0xf]  ;;  %v3434_v30 = vld [vmem:[#allocation5 + $0x458] sm:$0xf0] }
 0x100   :  { %2059 = vmatpush.bf16.msra.mxu3 %v3277_v33  ;;  %2021 = vmatmul.bf16.vlgmr.msra.gmra.mxu0 %v4875_v19  ;;  %v3850_v19 = vld [vmem:[#allocation5 + $0x798] sm:$0xf0]  ;;  %v3837_v33 = vor.u32 %v4491_v21, %v3834_v23  ;;  %v3952_v21 = vld [vmem:[#allocation8 + $0x60] sm:$0xf]  ;;  %v4551_v5 = vld [vmem:[#allocation8 + $0x144] sm:$0xf0] }
 0x101   :  { %2065 = vmatpush.bf16.msrb.mxu0 %v3517_v34  ;;  %v3853_v14 = vor.u32 %v4495_v7, %v3850_v19  ;;  %v3562_v34 = vld [vmem:[#allocation5 + $0x558] sm:$0xf0]  ;;  %v3960_v19 = vld [vmem:[#allocation8 + $0x70] sm:$0xf]  ;;  %v4016_v23 = vld [vmem:[#allocation8 + $0xe0] sm:$0xf] }
 0x102   :  { %2047 = vmatmul.bf16.vlgmr.msra.gmra.mxu2 %v4873_v18  ;;  %2034 = vmatmul.bf16.vlgmr.msra.gmra.mxu1 %v4879_v22  ;;  %v4431_v18 = vld [vmem:[#allocation5 + $0x58c] sm:$0xf]  ;;  %v3565_v45 = vor.u32 %v4423_v31, %v3562_v34  ;;  %v3402_v60 = vld [vmem:[#allocation5 + $0x418] sm:$0xf0] }
 0x103   :  { %2078 = vmatpush.bf16.msrb.mxu1 %v3645_v35  ;;  %2091 = vmatpush.bf16.msrb.mxu2 %v3773_v36  ;;  %v3597_v22 = vor.u32 %v4431_v18, %v3594_v4  ;;  %v4455_v35 = vld [vmem:[#allocation5 + $0x64c] sm:$0xf]  ;;  %v3690_v36 = vld [vmem:[#allocation5 + $0x658] sm:$0xf0] }
 0x104   :  { %2104 = vmatpush.bf16.msrb.mxu3 %v3901_v24  ;;  %v3437_v24 = vor.u32 %v4391_v29, %v3434_v30  ;;  %v3693_v46 = vor.u32 %v4455_v35, %v3690_v36  ;;  %v4479_v4 = vld [vmem:[#allocation5 + $0x70c] sm:$0xf]  ;;  %v3786_v7 = vld [vmem:[#allocation5 + $0x718] sm:$0xf0]  ;;  %v3944_v30 = vld [vmem:[#allocation8 + $0x50] sm:$0xf] }
 0x105   :  { %2060 = vmatmul.bf16.vlgmr.msra.gmra.mxu3 %v4877_v20  ;;  %2066 = vmatpush.bf16.msrb.mxu0 %v3501_v49  ;;  %v3469_v20 = vor.u32 %v4399_v1, %v3466_v2  ;;  %v4929_v32 = vpop.f32.mrf.mxu2  ;;  %v1816_v43 = vpop.f32.mrf.mxu0  ;;  %v4419_v49 = vld [vmem:[#allocation5 + $0x52c] sm:$0xf]  ;;  %v4541_v10 = vld [vmem:[#allocation8 + $0xf4] sm:$0xf0]  ;;  %v4088_v36 = vld [vmem:[#allocation8 + $0x170] sm:$0xf] }
 0x106   :  { %v3549_v61 = vor.u32 %v4419_v49, %v3546_v53  ;;  %v4447_v1 = vld [vmem:[#allocation5 + $0x60c] sm:$0xf]  ;;  %v4521_v31 = vld [vmem:[#allocation8 + $0x54] sm:$0xf0]  ;;  %v4000_v43 = vld [vmem:[#allocation8 + $0xc0] sm:$0xf] }
 0x107   :  { %2079 = vmatpush.bf16.msrb.mxu1 %v3629_v50  ;;  %2092 = vmatpush.bf16.msrb.mxu2 %v3757_v51  ;;  %v1829_v50 = vpop.f32.mrf.mxu1  ;;  %v3821_v51 = vor.u32 %v4487_v39, %v3818_v40  ;;  %v3945_v35 = vor.u32 %v4521_v31, %v3944_v30  ;;  %v4519_v40 = vld [vmem:[#allocation8 + $0x44] sm:$0xf0]  ;;  %v4517_v49 = vld [vmem:[#allocation8 + $0x34] sm:$0xf0]  ;;  %v3992_v53 = vld [vmem:[#allocation8 + $0xb0] sm:$0xf] }
 0x108   :  { %2105 = vmatpush.bf16.msrb.mxu3 %v3885_v56  ;;  %v4931_v37 = vpop.f32.mrf.mxu3  ;;  %v4483_v56 = vld [vmem:[#allocation5 + $0x72c] sm:$0xf]  ;;  %v4540_v31 = vld [vmem:[#allocation8 + $0xf4] sm:$0xf] }
 0x109   :  { %2067 = vmatpush.bf16.msrb.mxu0 %v3485_v62  ;;  %v3677_v62 = vor.u32 %v4451_v54, %v3674_v55  ;;  %v3805_v18 = vor.u32 %v4483_v56, %v3802_v57  ;;  %v4533_v54 = vld [vmem:[#allocation8 + $0xb4] sm:$0xf0]  ;;  %v3929_v55 = vor.u32 %v4517_v49, %v3928_v48  ;;  %v4072_v57 = vld [vmem:[#allocation8 + $0x150] sm:$0xf]  ;;  %v4032_v49 = vld [vmem:[#allocation8 + $0x100] sm:$0xf] }
 0x10b   :  { %2080 = vmatpush.bf16.msrb.mxu1 %v3613_v63  ;;  %2093 = vmatpush.bf16.msrb.mxu2 %v3741_v0  ;;  %v4415_v63 = vld [vmem:[#allocation5 + $0x50c] sm:$0xf]  ;;  %v3530_v0 = vld [vmem:[#allocation5 + $0x518] sm:$0xf0] }
 0x10c   :  { %2106 = vmatpush.bf16.msrb.mxu3 %v3869_v3  ;;  %v3658_v3 = vld [vmem:[#allocation5 + $0x618] sm:$0xf0]  ;;  %v3533_v11 = vor.u32 %v4415_v63, %v3530_v0  ;;  %v3984_v63 = vld [vmem:[#allocation8 + $0xa0] sm:$0xf]  ;;  %v4531_v0 = vld [vmem:[#allocation8 + $0xa4] sm:$0xf0] }
 0x10d   :  { %2068 = vmatpush.bf16.msrb.mxu0 %v3469_v20  ;;  %v1842_v2 = vpop.f32.mrf.mxu2  ;;  %v4525_v20 = vld [vmem:[#allocation8 + $0x74] sm:$0xf0]  ;;  %v3661_v12 = vor.u32 %v4447_v1, %v3658_v3 }
 0x10e   :  { %v3961_v15 = vor.u32 %v4525_v20, %v3960_v19  ;;  %v4513_v19 = vld [vmem:[#allocation8 + $0x14] sm:$0xf0] }
 0x10f   :  { %2081 = vmatpush.bf16.msrb.mxu1 %v3597_v22  ;;  %2094 = vmatpush.bf16.msrb.mxu2 %v3725_v9  ;;  %v3405_v22 = vor.u32 %v4383_v59, %v3402_v60  ;;  %v4024_v9 = vld [vmem:[#allocation8 + $0xf0] sm:$0xf]  ;;  %v3920_v59 = vld [vmem:[#allocation8 + $0x20] sm:$0xf]  ;;  %v4515_v60 = vld [vmem:[#allocation8 + $0x24] sm:$0xf0] }
 0x110   :  { %2107 = vmatpush.bf16.msrb.mxu3 %v3853_v14  ;;  %v1855_v6 = vpop.f32.mrf.mxu3  ;;  %v3789_v14 = vor.u32 %v4479_v4, %v3786_v7  ;;  %v4025_v17 = vor.u32 %v4541_v10, %v4024_v9  ;;  %v3921_v2 = vor.u32 %v4515_v60, %v3920_v59  ;;  %v4064_v4 = vld [vmem:[#allocation8 + $0x140] sm:$0xf]  ;;  %v3912_v7 = vld [vmem:[#allocation8 + $0x10] sm:$0xf]  ;;  %v4529_v10 = vld [vmem:[#allocation8 + $0x94] sm:$0xf0] }
 0x111   :  { %2069 = vmatpush.bf16.msrb.mxu0 %v3453_v25  ;;  %v4539_v25 = vld [vmem:[#allocation8 + $0xe4] sm:$0xf0]  ;;  %v3985_v6 = vor.u32 %v4531_v0, %v3984_v63  ;;  %v3976_v9 = vld [vmem:[#allocation8 + $0x90] sm:$0xf]  ;;  %v4534_v63 = vld [vmem:[#allocation8 + $0xc4] sm:$0xf] }
 0x112   :  { %v4017_v29 = vor.u32 %v4539_v25, %v4016_v23  ;;  %v4002_v0 = vld [vmem:[#allocation8 + $0xc8] sm:$0xf0] }
 0x113   :  { %2082 = vmatpush.bf16.msrb.mxu1 %v3581_v27  ;;  %2095 = vmatpush.bf16.msrb.mxu2 %v3709_v28  ;;  %v3953_v27 = vor.u32 %v4523_v26, %v3952_v21  ;;  %v1828_v28 = vadd.f32 %v4927_v13, %v1815_v16  ;;  %v4557_v13 = vld [vmem:[#allocation8 + $0x174] sm:$0xf0]  ;;  %v3977_v16 = vor.u32 %v4529_v10, %v3976_v9  ;;  %v4511_v21 = vld [vmem:[#allocation8 + $0x4] sm:$0xf0]  ;;  %v3968_v26 = vld [vmem:[#allocation8 + $0x80] sm:$0xf] }
 0x114   :  { %2108 = vmatpush.bf16.msrb.mxu3 %v3837_v33  ;;  %v4537_v33 = vld [vmem:[#allocation8 + $0xd4] sm:$0xf0]  ;;  %v4552_v10 = vld [vmem:[#allocation8 + $0x154] sm:$0xf] }
 0x115   :  { %2070 = vmatpush.bf16.msrb.mxu0 %v3437_v24  ;;  %v1841_v34 = vadd.f32 %v4929_v32, %v1828_v28  ;;  %v4009_v39 = vor.u32 %v4537_v33, %v4008_v8  ;;  %v4089_v24 = vor.u32 %v4557_v13, %v4088_v36  ;;  %v4524_v28 = vld [vmem:[#allocation8 + $0x74] sm:$0xf]  ;;  %v4026_v8 = vld [vmem:[#allocation8 + $0xf8] sm:$0xf0]  ;;  %v4547_v36 = vld [vmem:[#allocation8 + $0x124] sm:$0xf0] }
 0x117   :  { %2083 = vmatpush.bf16.msrb.mxu1 %v3565_v45  ;;  %2096 = vmatpush.bf16.msrb.mxu2 %v3693_v46  ;;  %v4535_v45 = vld [vmem:[#allocation8 + $0xc4] sm:$0xf0] }
 0x118   :  { %2109 = vmatpush.bf16.msrb.mxu3 %v3821_v51  ;;  %v4001_v32 = vor.u32 %v4535_v45, %v4000_v43  ;;  %v3954_v43 = vld [vmem:[#allocation8 + $0x68] sm:$0xf0]  ;;  %v4538_v45 = vld [vmem:[#allocation8 + $0xe4] sm:$0xf] }
 0x119   :  { %2071 = vmatpush.bf16.msrb.mxu0 %v3421_v58  ;;  %v4553_v58 = vld [vmem:[#allocation8 + $0x154] sm:$0xf0] }
 0x11b   :  { %2084 = vmatpush.bf16.msrb.mxu1 %v3549_v61  ;;  %2097 = vmatpush.bf16.msrb.mxu2 %v3677_v62  ;;  %v4073_v62 = vor.u32 %v4553_v58, %v4072_v57  ;;  %v4536_v57 = vld [vmem:[#allocation8 + $0xd4] sm:$0xf]  ;;  %v4010_v58 = vld [vmem:[#allocation8 + $0xd8] sm:$0xf0] }
 0x11c   :  { %2110 = vmatpush.bf16.msrb.mxu3 %v3805_v18  ;;  %v4013_v60 = vor.u32 %v4536_v57, %v4010_v58 }
 0x11d   :  { %2072 = vmatpush.bf16.msrb.mxu0 %v3405_v22  ;;  %v1866_v46 = vpop.f32.mrf.mxu0  ;;  %v4065_v22 = vor.u32 %v4551_v5, %v4064_v4  ;;  %v4516_v4 = vld [vmem:[#allocation8 + $0x34] sm:$0xf]  ;;  %v3930_v5 = vld [vmem:[#allocation8 + $0x38] sm:$0xf0] }
 0x11e   :  { %v3933_v9 = vor.u32 %v4516_v4, %v3930_v5 }
 0x11f   :  { %2085 = vmatpush.bf16.msrb.mxu1 %v3533_v11  ;;  %2098 = vmatpush.bf16.msrb.mxu2 %v3661_v12  ;;  %v1879_v50 = vpop.f32.mrf.mxu1  ;;  %v3913_v12 = vor.u32 %v4513_v19, %v3912_v7  ;;  %v4532_v19 = vld [vmem:[#allocation8 + $0xb4] sm:$0xf] }
 0x120   :  { %2111 = vmatpush.bf16.msrb.mxu3 %v3789_v14  ;;  %2073 = vmatmul.bf16.vlgmr.msrb.gmra.mxu0 %v4887_v41  ;;  %v3936_v41 = vld [vmem:[#allocation8 + $0x40] sm:$0xf]  ;;  %v4056_v14 = vld [vmem:[#allocation8 + $0x130] sm:$0xf] }
 0x121   :  { %2511 = vmatpush.bf16.msra.mxu0 %v3961_v15  ;;  %v4549_v15 = vld [vmem:[#allocation8 + $0x134] sm:$0xf0] }
 0x122   :  { %2086 = vmatmul.bf16.vlgmr.msrb.gmra.mxu1 %v4891_v44  ;;  %2099 = vmatmul.bf16.vlgmr.msrb.gmra.mxu2 %v4885_v38  ;;  %v1854_v38 = vadd.f32 %v4931_v37, %v1841_v34  ;;  %v3937_v44 = vor.u32 %v4519_v40, %v3936_v41  ;;  %v3993_v37 = vor.u32 %v4533_v54, %v3992_v53  ;;  %v4520_v54 = vld [vmem:[#allocation8 + $0x54] sm:$0xf] }
 0x123   :  { %2524 = vmatpush.bf16.msra.mxu1 %v4025_v17  ;;  %2112 = vmatmul.bf16.vlgmr.msrb.gmra.mxu3 %v4889_v42  ;;  %v4080_v42 = vld [vmem:[#allocation8 + $0x160] sm:$0xf]  ;;  %v4057_v25 = vor.u32 %v4549_v15, %v4056_v14  ;;  %v4029_v40 = vor.u32 %v4540_v31, %v4026_v8  ;;  %v4514_v14 = vld [vmem:[#allocation8 + $0x24] sm:$0xf]  ;;  %v3922_v15 = vld [vmem:[#allocation8 + $0x28] sm:$0xf0] }
 0x124   :  { %2537 = vmatpush.bf16.msra.mxu2 %v4089_v24  ;;  %v4081_v51 = vor.u32 %v4555_v47, %v4080_v42  ;;  %v1867_v56 = vadd.f32 %v1866_v46, %v1854_v38  ;;  %v3904_v17 = vld [vmem:[#allocation8] sm:$0xf]  ;;  %v4522_v24 = vld [vmem:[#allocation8 + $0x64] sm:$0xf]  ;;  %v4018_v38 = vld [vmem:[#allocation8 + $0xe8] sm:$0xf0]  ;;  %v4946_v47 = vpack.c.bf16 %v4919_v52, %v4919_v52 }
 0x125   :  { %2512 = vmatpush.bf16.msra.mxu0 %v3953_v27  ;;  %v1892_v61 = vpop.f32.mrf.mxu2  ;;  %v1868_v3 = vpop.f32.mrf.mxu0  ;;  %v4527_v27 = vld [vmem:[#allocation8 + $0x84] sm:$0xf0]  ;;  %v3905_v34 = vor.u32 %v4511_v21, %v3904_v17  ;;  %v4040_v46 = vld [vmem:[#allocation8 + $0x110] sm:$0xf]  ;;  %v4545_v42 = vld [vmem:[#allocation8 + $0x114] sm:$0xf0]  ;;  %v4021_v53 = vor.u32 %v4538_v45, %v4018_v38 }
 0x126   :  { %v1880_v18 = vadd.f32 %v1879_v50, %v1867_v56  ;;  %v3969_v13 = vor.u32 %v4527_v27, %v3968_v26  ;;  %v4041_v48 = vor.u32 %v4545_v42, %v4040_v46  ;;  %v4543_v50 = vld [vmem:[#allocation8 + $0x104] sm:$0xf0]  ;;  %v4090_v56 = vld [vmem:[#allocation8 + $0x178] sm:$0xf0]  ;;  %v4005_v3 = vor.u32 %v4534_v63, %v4002_v0  ;;  %v4530_v17 = vld [vmem:[#allocation8 + $0xa4] sm:$0xf] }
 0x127   :  { %2525 = vmatpush.bf16.msra.mxu1 %v4017_v29  ;;  %v1881_v20 = vpop.f32.mrf.mxu1  ;;  %v3962_v29 = vld [vmem:[#allocation8 + $0x78] sm:$0xf0]  ;;  %v3986_v21 = vld [vmem:[#allocation8 + $0xa8] sm:$0xf0]  ;;  %v4550_v27 = vld [vmem:[#allocation8 + $0x144] sm:$0xf] }
 0x128   :  { %2538 = vmatpush.bf16.msra.mxu2 %v4081_v51  ;;  %v1905_v1 = vpop.f32.mrf.mxu3  ;;  %v1893_v11 = vadd.f32 %v1892_v61, %v1880_v18  ;;  %v4556_v51 = vld [vmem:[#allocation8 + $0x174] sm:$0xf]  ;;  %v4518_v61 = vld [vmem:[#allocation8 + $0x44] sm:$0xf]  ;;  %v4082_v18 = vld [vmem:[#allocation8 + $0x168] sm:$0xf0] }
 0x129   :  { %2513 = vmatpush.bf16.msra.mxu0 %v3945_v35  ;;  %v4048_v35 = vld [vmem:[#allocation8 + $0x120] sm:$0xf]  ;;  %v4093_v52 = vor.u32 %v4556_v51, %v4090_v56  ;;  %v3994_v20 = vld [vmem:[#allocation8 + $0xb8] sm:$0xf0]  ;;  %v4546_v45 = vld [vmem:[#allocation8 + $0x124] sm:$0xf] }
 0x12a   :  { %v1906_v33 = vadd.f32 %v1905_v1, %v1893_v11  ;;  %v4049_v41 = vor.u32 %v4547_v36, %v4048_v35  ;;  %v4074_v11 = vld [vmem:[#allocation8 + $0x158] sm:$0xf0]  ;;  %v4050_v38 = vld [vmem:[#allocation8 + $0x128] sm:$0xf0]  ;;  %v4510_v42 = vld [vmem:[#allocation8 + $0x4] sm:$0xf] }
 0x12b   :  { %2526 = vmatpush.bf16.msra.mxu1 %v4009_v39  ;;  %v3965_v39 = vor.u32 %v4524_v28, %v3962_v29  ;;  %v4066_v28 = vld [vmem:[#allocation8 + $0x148] sm:$0xf0]  ;;  %v3989_v29 = vor.u32 %v4530_v17, %v3986_v21  ;;  %v3914_v31 = vld [vmem:[#allocation8 + $0x18] sm:$0xf0] }
 0x12c   :  { %2539 = vmatpush.bf16.msra.mxu2 %v4073_v62  ;;  %v3938_v62 = vld [vmem:[#allocation8 + $0x48] sm:$0xf0]  ;;  %v3978_v35 = vld [vmem:[#allocation8 + $0x98] sm:$0xf0] }
 0x12d   :  { %2514 = vmatpush.bf16.msra.mxu0 %v3937_v44  ;;  %v1894_v23 = vpop.f32.mrf.mxu2  ;;  %v4942_v44 = vpack.c.bf16 %v1906_v33, %v1906_v33  ;;  %v3941_v1 = vor.u32 %v4518_v61, %v3938_v62  ;;  %v4069_v33 = vor.u32 %v4550_v27, %v4066_v28  ;;  %v4542_v62 = vld [vmem:[#allocation8 + $0x104] sm:$0xf]  ;;  %v4034_v63 = vld [vmem:[#allocation8 + $0x108] sm:$0xf0] }
 0x12e   :  { %v4037_v0 = vor.u32 %v4542_v62, %v4034_v63 }
 0x12f   :  { %2527 = vmatpush.bf16.msra.mxu1 %v4001_v32  ;;  %v3957_v32 = vor.u32 %v4522_v24, %v3954_v43 }
 0x130   :  { %2540 = vmatpush.bf16.msra.mxu2 %v4065_v22  ;;  %v1907_v30 = vpop.f32.mrf.mxu3 }
 0x131   :  { %2515 = vmatpush.bf16.msra.mxu0 %v3929_v55  ;;  %v3946_v55 = vld [vmem:[#allocation8 + $0x58] sm:$0xf0]  ;;  %v4512_v30 = vld [vmem:[#allocation8 + $0x14] sm:$0xf] }
 0x132   :  { %v3949_v59 = vor.u32 %v4520_v54, %v3946_v55  ;;  %v4053_v55 = vor.u32 %v4546_v45, %v4050_v38  ;;  %v4146_v45 = vld [vmem:[#allocation8 + $0x1e8] sm:$0xf0] }
 0x133   :  { %2528 = vmatpush.bf16.msra.mxu1 %v3993_v37  ;;  %v4033_v37 = vor.u32 %v4543_v50, %v4032_v49  ;;  %v4526_v49 = vld [vmem:[#allocation8 + $0x84] sm:$0xf]  ;;  %v3970_v50 = vld [vmem:[#allocation8 + $0x88] sm:$0xf0] }
 0x134   :  { %2541 = vmatpush.bf16.msra.mxu2 %v4057_v25  ;;  %v3925_v25 = vor.u32 %v4514_v14, %v3922_v15  ;;  %v4120_v15 = vld [vmem:[#allocation8 + $0x1b0] sm:$0xf] }
 0x135   :  { %2516 = vmatpush.bf16.msra.mxu0 %v3921_v2  ;;  %v4554_v2 = vld [vmem:[#allocation8 + $0x164] sm:$0xf] }
 0x136   :  { %v4085_v7 = vor.u32 %v4554_v2, %v4082_v18  ;;  %v4144_v2 = vld [vmem:[#allocation8 + $0x1e0] sm:$0xf]  ;;  %v4571_v18 = vld [vmem:[#allocation8 + $0x1e4] sm:$0xf0] }
 0x137   :  { %2529 = vmatpush.bf16.msra.mxu1 %v3985_v6  ;;  %v4145_v5 = vor.u32 %v4571_v18, %v4144_v2 }
 0x138   :  { %2542 = vmatpush.bf16.msra.mxu2 %v4049_v41  ;;  %v3917_v41 = vor.u32 %v4512_v30, %v3914_v31  ;;  %v4104_v30 = vld [vmem:[#allocation8 + $0x190] sm:$0xf]  ;;  %v4561_v31 = vld [vmem:[#allocation8 + $0x194] sm:$0xf0] }
 0x139   :  { %2517 = vmatpush.bf16.msra.mxu0 %v3913_v12  ;;  %v3997_v12 = vor.u32 %v4532_v19, %v3994_v20 }
 0x13b   :  { %2530 = vmatpush.bf16.msra.mxu1 %v3977_v16  ;;  %v4077_v16 = vor.u32 %v4552_v10, %v4074_v11  ;;  %v4567_v10 = vld [vmem:[#allocation8 + $0x1c4] sm:$0xf0] }
 0x13c   :  { %2543 = vmatpush.bf16.msra.mxu2 %v4041_v48  ;;  %v4152_v48 = vld [vmem:[#allocation8 + $0x1f0] sm:$0xf] }
 0x13d   :  { %2518 = vmatpush.bf16.msra.mxu0 %v3905_v34  ;;  %v1918_v6 = vpop.f32.mrf.mxu0  ;;  %v4528_v34 = vld [vmem:[#allocation8 + $0x94] sm:$0xf] }
 0x13e   :  { %v3981_v46 = vor.u32 %v4528_v34, %v3978_v35  ;;  %v4105_v34 = vor.u32 %v4561_v31, %v4104_v30  ;;  %v4096_v35 = vld [vmem:[#allocation8 + $0x180] sm:$0xf] }
 0x13f   :  { %2531 = vmatpush.bf16.msra.mxu1 %v3969_v13  ;;  %v1931_v22 = vpop.f32.mrf.mxu1  ;;  %v4548_v13 = vld [vmem:[#allocation8 + $0x134] sm:$0xf] }
 0x140   :  { %2519 = vmatmul.bf16.vlgmr.msra.gmra.mxu0 %v4946_v47  ;;  %2544 = vmatpush.bf16.msra.mxu2 %v4033_v37  ;;  %v4544_v37 = vld [vmem:[#allocation8 + $0x114] sm:$0xf] }
 0x141   :  { %2563 = vmatpush.bf16.msrb.mxu0 %v3965_v39  ;;  %v4058_v39 = vld [vmem:[#allocation8 + $0x138] sm:$0xf0] }
 0x142   :  { %2532 = vmatmul.bf16.vlgmr.msra.gmra.mxu1 %v4942_v44  ;;  %v4061_v43 = vor.u32 %v4548_v13, %v4058_v39  ;;  %v4572_v13 = vld [vmem:[#allocation8 + $0x1f4] sm:$0xf]  ;;  %v4154_v39 = vld [vmem:[#allocation8 + $0x1f8] sm:$0xf0] }
 0x143   :  { %2576 = vmatpush.bf16.msrb.mxu1 %v4029_v40  ;;  %v4950_v40 = vld [vmem:[#allocation7] sm:$0xf] }
 0x144   :  { %2589 = vmatpush.bf16.msrb.mxu2 %v4093_v52  ;;  %v387_v24 = vperm.slane %v4950_v40, 2  ;;  %v4042_v52 = vld [vmem:[#allocation8 + $0x118] sm:$0xf0] }
 0x145   :  { %2564 = vmatpush.bf16.msrb.mxu0 %v3957_v32  ;;  %v1944_v26 = vpop.f32.mrf.mxu2  ;;  %v1920_v8 = vpop.f32.mrf.mxu0  ;;  %v3906_v32 = vld [vmem:[#allocation8 + $0x8] sm:$0xf0] }
 0x146   :  { %v1919_v57 = vadd.f32 %v1918_v6, %v387_v24  ;;  %v3909_v58 = vor.u32 %v4510_v42, %v3906_v32  ;;  %v4569_v6 = vld [vmem:[#allocation8 + $0x1d4] sm:$0xf0]  ;;  %v4157_v24 = vor.u32 %v4572_v13, %v4154_v39  ;;  %v4568_v32 = vld [vmem:[#allocation8 + $0x1d4] sm:$0xf] }
 0x147   :  { %2577 = vmatpush.bf16.msrb.mxu1 %v4021_v53  ;;  %v1933_v36 = vpop.f32.mrf.mxu1  ;;  %v4573_v53 = vld [vmem:[#allocation8 + $0x1f4] sm:$0xf0] }
 0x148   :  { %2590 = vmatpush.bf16.msrb.mxu2 %v4085_v7  ;;  %v1957_v23 = vpop.f32.mrf.mxu3  ;;  %v4153_v56 = vor.u32 %v4573_v53, %v4152_v48  ;;  %v1932_v61 = vadd.f32 %v1931_v22, %v1919_v57  ;;  %v4559_v36 = vld [vmem:[#allocation8 + $0x184] sm:$0xf0]  ;;  %v4138_v48 = vld [vmem:[#allocation8 + $0x1d8] sm:$0xf0]  ;;  %v4130_v53 = vld [vmem:[#allocation8 + $0x1c8] sm:$0xf0] }
 0x149   :  { %2565 = vmatpush.bf16.msrb.mxu0 %v3949_v59  ;;  %v3973_v59 = vor.u32 %v4526_v49, %v3970_v50  ;;  %v4141_v49 = vor.u32 %v4568_v32, %v4138_v48  ;;  %v4578_v32 = vld [vmem:[#allocation10 + $0x20] sm:$0xff]  ;;  %v4577_v48 = vld [vmem:[#allocation10 + $0x18] sm:$0xff] }
 0x14a   :  { %2550 = vmatpush.bf16.msra.mxu3 %v4153_v56 }
 0x14b   :  { %2578 = vmatpush.bf16.msrb.mxu1 %v4013_v60  ;;  %v4045_v60 = vor.u32 %v4544_v37, %v4042_v52  ;;  %v4122_v37 = vld [vmem:[#allocation8 + $0x1b8] sm:$0xf0] }
 0x14c   :  { %2591 = vmatpush.bf16.msrb.mxu2 %v4077_v16  ;;  %v4565_v16 = vld [vmem:[#allocation8 + $0x1b4] sm:$0xf0] }
 0x14d   :  { %2566 = vmatpush.bf16.msrb.mxu0 %v3941_v1  ;;  %v1946_v51 = vpop.f32.mrf.mxu2  ;;  %v1945_v1 = vadd.f32 %v1944_v26, %v1932_v61  ;;  %v4121_v17 = vor.u32 %v4565_v16, %v4120_v15  ;;  %v4114_v61 = vld [vmem:[#allocation8 + $0x1a8] sm:$0xf0] }
 0x14e   :  { %2551 = vmatpush.bf16.msra.mxu3 %v4145_v5  ;;  %v4566_v51 = vld [vmem:[#allocation8 + $0x1c4] sm:$0xf]  ;;  %v4098_v5 = vld [vmem:[#allocation8 + $0x188] sm:$0xf0] }
 0x14f   :  { %2579 = vmatpush.bf16.msrb.mxu1 %v4005_v3  ;;  %v4136_v3 = vld [vmem:[#allocation8 + $0x1d0] sm:$0xf]  ;;  %v1958_v4 = vadd.f32 %v1957_v23, %v1945_v1  ;;  %v4112_v23 = vld [vmem:[#allocation8 + $0x1a0] sm:$0xf]  ;;  %v4106_v1 = vld [vmem:[#allocation8 + $0x198] sm:$0xf0] }
 0x150   :  { %2592 = vmatpush.bf16.msrb.mxu2 %v4069_v33  ;;  %v1959_v54 = vpop.f32.mrf.mxu3  ;;  %v4137_v7 = vor.u32 %v4569_v6, %v4136_v3 }
 0x151   :  { %2567 = vmatpush.bf16.msrb.mxu0 %v3933_v9  ;;  %v4128_v9 = vld [vmem:[#allocation8 + $0x1c0] sm:$0xf] }
 0x152   :  { %2552 = vmatpush.bf16.msra.mxu3 %v4137_v7  ;;  %v4129_v11 = vor.u32 %v4567_v10, %v4128_v9 }
 0x153   :  { %2580 = vmatpush.bf16.msrb.mxu1 %v3997_v12 }
 0x154   :  { %2593 = vmatpush.bf16.msrb.mxu2 %v4061_v43  ;;  %v4570_v43 = vld [vmem:[#allocation8 + $0x1e4] sm:$0xf] }
 0x155   :  { %2568 = vmatpush.bf16.msrb.mxu0 %v3925_v25  ;;  %v4563_v25 = vld [vmem:[#allocation8 + $0x1a4] sm:$0xf0]  ;;  %v4149_v38 = vor.u32 %v4570_v43, %v4146_v45  ;;  %v4580_v43 = vld [vmem:[#allocation10 + $0x30] sm:$0xff] }
 0x156   :  { %2553 = vmatpush.bf16.msra.mxu3 %v4129_v11  ;;  %v4588_v45 = vld [vmem:[#allocation10 + $0x70] sm:$0xff] }
 0x157   :  { %2581 = vmatpush.bf16.msrb.mxu1 %v3989_v29  ;;  %v4113_v29 = vor.u32 %v4563_v25, %v4112_v23 }
 0x158   :  { %2594 = vmatpush.bf16.msrb.mxu2 %v4053_v55  ;;  %v4133_v55 = vor.u32 %v4566_v51, %v4130_v53  ;;  %v4575_v51 = vld [vmem:[#allocation10 + $0x8] sm:$0xff] }
 0x159   :  { %2569 = vmatpush.bf16.msrb.mxu0 %v3917_v41  ;;  %v4097_v41 = vor.u32 %v4559_v36, %v4096_v35 }
 0x15a   :  { %2554 = vmatpush.bf16.msra.mxu3 %v4121_v17 }
 0x15b   :  { %2582 = vmatpush.bf16.msrb.mxu1 %v3981_v46 }
 0x15c   :  { %2595 = vmatpush.bf16.msrb.mxu2 %v4045_v60  ;;  %v4562_v60 = vld [vmem:[#allocation8 + $0x1a4] sm:$0xf] }
 0x15d   :  { %2570 = vmatpush.bf16.msrb.mxu0 %v3909_v58  ;;  %v1970_v19 = vpop.f32.mrf.mxu0  ;;  %v4564_v58 = vld [vmem:[#allocation8 + $0x1b4] sm:$0xf]  ;;  %v4117_v63 = vor.u32 %v4562_v60, %v4114_v61  ;;  %v4595_v61 = vld [vmem:[#allocation11 + $0x28] sm:$0xff] }
 0x15e   :  { %v1971_v20 = vadd.f32 %v1970_v19, %v1958_v4  ;;  %2555 = vmatpush.bf16.msra.mxu3 %v4113_v29  ;;  %v4125_v52 = vor.u32 %v4564_v58, %v4122_v37  ;;  %v4558_v4 = vld [vmem:[#allocation8 + $0x184] sm:$0xf]  ;;  %v4584_v58 = vld [vmem:[#allocation10 + $0x50] sm:$0xff]  ;;  %v4583_v37 = vld [vmem:[#allocation10 + $0x48] sm:$0xff] }
 0x15f   :  { %2583 = vmatpush.bf16.msrb.mxu1 %v3973_v59  ;;  %v1983_v22 = vpop.f32.mrf.mxu1  ;;  %v388_v59 = vperm.slane %v4950_v40, 3  ;;  %v4101_v7 = vor.u32 %v4558_v4, %v4098_v5  ;;  %v4596_v60 = vld [vmem:[#allocation11 + $0x30] sm:$0xff] }
 0x160   :  { %2571 = vmatmul.bf16.vlgmr.msrb.gmra.mxu0 %v4946_v47  ;;  %2596 = vmatpush.bf16.msrb.mxu2 %v4037_v0  ;;  %v1984_v47 = vadd.f32 %v1983_v22, %v1971_v20  ;;  %v4560_v0 = vld [vmem:[#allocation8 + $0x194] sm:$0xf] }
 0x161   :  { %v4109_v3 = vor.u32 %v4560_v0, %v4106_v1 }
 0x162   :  { %2584 = vmatmul.bf16.vlgmr.msrb.gmra.mxu1 %v4942_v44  ;;  %2556 = vmatpush.bf16.msra.mxu3 %v4105_v34 }
 0x165   :  { %v1996_v12 = vpop.f32.mrf.mxu2  ;;  %v1972_v26 = vpop.f32.mrf.mxu0 }
 0x166   :  { %v1997_v14 = vadd.f32 %v1996_v12, %v1984_v47  ;;  %2557 = vmatpush.bf16.msra.mxu3 %v4097_v41  ;;  %v2185_v26 = vld [vmem:[%s4972_s4] sm:$0x3] }
 0x167   :  { %v1985_v27 = vpop.f32.mrf.mxu1  ;;  %v2187_v23 = vperm.slane %v2185_v26, 0  ;;  %v4581_v41 = vld [vmem:[#allocation10 + $0x38] sm:$0xff] }
 0x168   :  { %v2009_v44 = vpop.f32.mrf.mxu3  ;;  %2749 = vmatpush.bf16.msra.mxu0 %v4581_v41 }
 0x169   :  { %v2010_v21 = vadd.f32 %v2009_v44, %v1997_v14 }
 0x16a   :  { %2602 = vmatpush.bf16.msrb.mxu3 %v4157_v24  ;;  %v4589_v24 = vld [vmem:[#allocation10 + $0x78] sm:$0xff] }
 0x16b   :  { %v2119_v28 = vpack.c.bf16 %v2010_v21, %v2010_v21  ;;  %2762 = vmatpush.bf16.msra.mxu1 %v4589_v24 }
 0x16c   :  { %2750 = vmatpush.bf16.msra.mxu0 %v4580_v43 }
 0x16d   :  { %2545 = vmatmul.bf16.vlgmr.msra.gmra.mxu2 %v2119_v28  ;;  %v1998_v8 = vpop.f32.mrf.mxu2 }
 0x16e   :  { %2603 = vmatpush.bf16.msrb.mxu3 %v4149_v38  ;;  %v2188_v8 = vperm.slane %v2185_v26, 1  ;;  %v4579_v38 = vld [vmem:[#allocation10 + $0x28] sm:$0xff] }
 0x16f   :  { %2763 = vmatpush.bf16.msra.mxu1 %v4588_v45 }
 0x170   :  { %v2011_v33 = vpop.f32.mrf.mxu3  ;;  %2751 = vmatpush.bf16.msra.mxu0 %v4579_v38 }
 0x172   :  { %2604 = vmatpush.bf16.msrb.mxu3 %v4141_v49 }
 0x174   :  { %2752 = vmatpush.bf16.msra.mxu0 %v4578_v32 }
 0x176   :  { %2605 = vmatpush.bf16.msrb.mxu3 %v4133_v55  ;;  %v4574_v55 = vld [vmem:[#allocation10] sm:$0xff] }
 0x178   :  { %2753 = vmatpush.bf16.msra.mxu0 %v4577_v48 }
 0x17a   :  { %2606 = vmatpush.bf16.msrb.mxu3 %v4125_v52  ;;  %v4582_v52 = vld [vmem:[#allocation10 + $0x40] sm:$0xff] }
 0x17d   :  { %2597 = vmatmul.bf16.vlgmr.msrb.gmra.mxu2 %v2119_v28  ;;  %v2022_v46 = vpop.f32.mrf.mxu0 }
 0x17e   :  { %v2023_v18 = vadd.f32 %v2022_v46, %v388_v59  ;;  %2607 = vmatpush.bf16.msrb.mxu3 %v4117_v63  ;;  %v4587_v46 = vld [vmem:[#allocation10 + $0x68] sm:$0xff]  ;;  %v4597_v59 = vld [vmem:[#allocation11 + $0x38] sm:$0xff] }
 0x17f   :  { %v2035_v42 = vpop.f32.mrf.mxu1  ;;  %2764 = vmatpush.bf16.msra.mxu1 %v4587_v46  ;;  %2844 = vmatpush.bf16.msra.mxu2 %v4597_v59 }
 0x180   :  { %v2036_v6 = vadd.f32 %v2035_v42, %v2023_v18 }
 0x182   :  { %2608 = vmatpush.bf16.msrb.mxu3 %v4109_v3 }
 0x183   :  { %2845 = vmatpush.bf16.msra.mxu2 %v4596_v60 }
 0x185   :  { %v2048_v50 = vpop.f32.mrf.mxu2  ;;  %v2024_v56 = vpop.f32.mrf.mxu0 }
 0x186   :  { %v2049_v19 = vadd.f32 %v2048_v50, %v2036_v6  ;;  %2609 = vmatpush.bf16.msrb.mxu3 %v4101_v7  ;;  %v4576_v50 = vld [vmem:[#allocation10 + $0x10] sm:$0xff]  ;;  %v4586_v56 = vld [vmem:[#allocation10 + $0x60] sm:$0xff] }
 0x187   :  { %v2037_v57 = vpop.f32.mrf.mxu1  ;;  %2754 = vmatpush.bf16.msra.mxu0 %v4576_v50  ;;  %2765 = vmatpush.bf16.msra.mxu1 %v4586_v56  ;;  %v4594_v7 = vld [vmem:[#allocation11 + $0x20] sm:$0xff] }
 0x188   :  { %v2061_v54 = vpop.f32.mrf.mxu3  ;;  %v4585_v57 = vld [vmem:[#allocation10 + $0x58] sm:$0xff]  ;;  %2846 = vmatpush.bf16.msra.mxu2 %v4595_v61 }
 0x189   :  { %v2062_v20 = vadd.f32 %v2061_v54, %v2049_v19  ;;  %v4593_v19 = vld [vmem:[#allocation11 + $0x18] sm:$0xff] }
 0x18b   :  { %2755 = vmatpush.bf16.msra.mxu0 %v4575_v51  ;;  %2766 = vmatpush.bf16.msra.mxu1 %v4585_v57 }
 0x18c   :  { %2847 = vmatpush.bf16.msra.mxu2 %v4594_v7 }
 0x18d   :  { %v2050_v62 = vpop.f32.mrf.mxu2 }
 0x18f   :  { %2756 = vmatpush.bf16.msra.mxu0 %v4574_v55  ;;  %2767 = vmatpush.bf16.msra.mxu1 %v4584_v58 }
 0x190   :  { %v2063_v2 = vpop.f32.mrf.mxu3  ;;  %2848 = vmatpush.bf16.msra.mxu2 %v4593_v19 }
 0x193   :  { %2768 = vmatpush.bf16.msra.mxu1 %v4583_v37 }
 0x197   :  { %2769 = vmatpush.bf16.msra.mxu1 %v4582_v52 }
 0x19d   :  { %v2074_v40 = vpop.f32.mrf.mxu0 }
 0x19e   :  { %v2075_v9 = vadd.f32 %v2074_v40, %v2062_v20  ;;  %v4592_v20 = vld [vmem:[#allocation11 + $0x10] sm:$0xff]  ;;  %v4591_v40 = vld [vmem:[#allocation11 + $0x8] sm:$0xff] }
 0x19f   :  { %v2087_v22 = vpop.f32.mrf.mxu1  ;;  %2849 = vmatpush.bf16.msra.mxu2 %v4592_v20 }
 0x1a0   :  { %v2088_v10 = vadd.f32 %v2087_v22, %v2075_v9  ;;  %v4590_v22 = vld [vmem:[#allocation11] sm:$0xff] }
 0x1a3   :  { %2850 = vmatpush.bf16.msra.mxu2 %v4591_v40 }
 0x1a5   :  { %v2100_v47 = vpop.f32.mrf.mxu2  ;;  %v2076_v14 = vpop.f32.mrf.mxu0 }
 0x1a6   :  { %v2101_v11 = vadd.f32 %v2100_v47, %v2088_v10  ;;  %v2113_v12 = vpop.f32.mrf.mxu3  ;;  %v4611_v47 = vld [vmem:[%s4974_s6] ss:$0 sm:$0xff] }
 0x1a7   :  { %v2089_v44 = vpop.f32.mrf.mxu1  ;;  %2851 = vmatpush.bf16.msra.mxu2 %v4590_v22 }
 0x1a8   :  { %v2114_v15 = vadd.f32 %v2113_v12, %v2101_v11 }
 0x1aa   :  { %v2120_v16 = vpack.c.bf16 %v2114_v15, %v2114_v15 }
 0x1ac   :  { %2558 = vmatmul.bf16.vlgmr.msra.gmra.mxu3 %v2120_v16 }
 0x1ad   :  { %v2102_v17 = vpop.f32.mrf.mxu2 }
 0x1ae   :  { %v2115_v21 = vpop.f32.mrf.mxu3 }
 0x1bc   :  { %2610 = vmatmul.bf16.vlgmr.msrb.gmra.mxu3 %v2120_v16  ;;  %v4612_v16 = vld [vmem:[%s4976_s8] ss:$0 sm:$0xff] }
 0x1bd   :  { %v2520_v25 = vpop.f32.mrf.mxu0 }
 0x1be   :  { %v2521_v27 = vadd.f32 %v2520_v25, %v2187_v23 }
 0x1bf   :  { %v2533_v28 = vpop.f32.mrf.mxu1 }
 0x1c0   :  { %v2534_v29 = vadd.f32 %v2533_v28, %v2521_v27 }
 0x1c5   :  { %v2522_v30 = vpop.f32.mrf.mxu0 }
 0x1c7   :  { %v2535_v31 = vpop.f32.mrf.mxu1 }
 0x1dd   :  { %v2572_v33 = vpop.f32.mrf.mxu0 }
 0x1de   :  { %v2573_v34 = vadd.f32 %v2572_v33, %v2188_v8 }
 0x1df   :  { %v2585_v35 = vpop.f32.mrf.mxu1 }
 0x1e0   :  { %v2586_v36 = vadd.f32 %v2585_v35, %v2573_v34 }
 0x1e5   :  { %v2574_v13 = vpop.f32.mrf.mxu0 }
 0x1e7   :  { %v2587_v39 = vpop.f32.mrf.mxu1 }
 0x1f0   :  { %v2546_v42 = vpop.f32.mrf.mxu2 }
 0x1f1   :  { %v2547_v62 = vadd.f32 %v2546_v42, %v2534_v29 }
 0x1f8   :  { %v2548_v49 = vpop.f32.mrf.mxu2 }
 0x200   :  { %v2598_v53 = vpop.f32.mrf.mxu2 }
 0x201   :  { %v2599_v18 = vadd.f32 %v2598_v53, %v2586_v36 }
 0x208   :  { %v2600_v54 = vpop.f32.mrf.mxu2 }
 0x22f   :  { %v2559_v63 = vpop.f32.mrf.mxu3 }
 0x230   :  { %v2560_v0 = vadd.f32 %v2559_v63, %v2547_v62 }
 0x232   :  { %v2615_v1 = vpack.c.bf16 %v2560_v0, %v2560_v0 }
 0x234   :  { %2757 = vmatmul.bf16.vlgmr.msra.gmra.mxu0 %v2615_v1 }
 0x237   :  { %v2561_v2 = vpop.f32.mrf.mxu3 }
 0x23f   :  { %v2611_v3 = vpop.f32.mrf.mxu3 }
 0x240   :  { %v2612_v4 = vadd.f32 %v2611_v3, %v2599_v18 }
 0x242   :  { %v2616_v5 = vpack.c.bf16 %v2612_v4, %v2612_v4 }
 0x244   :  { %2770 = vmatmul.bf16.vlgmr.msra.gmra.mxu1 %v2616_v5 }
 0x247   :  { %v2613_v6 = vpop.f32.mrf.mxu3 }
 0x2b1   :  { %v2758_v9 = vpop.f32.mrf.mxu0 }
 0x2b2   :  { %v2759_v11 = vadd.f32 %v4611_v47, %v2758_v9 }
 0x2b9   :  { %v2760_v10 = vpop.f32.mrf.mxu0 }
 0x2c1   :  { %v2771_v12 = vpop.f32.mrf.mxu1 }
 0x2c2   :  { %v2772_v14 = vadd.f32 %v2771_v12, %v2759_v11 }
 0x2c4   :  { %v2775_v44 = vpack.c.bf16 %v2772_v14, %v2772_v14 }
 0x2c6   :  { %2852 = vmatmul.bf16.vlgmr.msra.gmra.mxu2 %v2775_v44 }
 0x2c9   :  { %v2773_v15 = vpop.f32.mrf.mxu1 }
 0x349   :  { %v2853_v17 = vpop.f32.mrf.mxu2 }
 0x34a   :  { %v2854_v21 = vadd.f32 %v4612_v16, %v2853_v17 }
 0x34c   :  { %2857 = vst [vmem:[#allocation13] sm:$0xff] %v2854_v21 }
 0x34d   :  { %2868 = dma.vmem_to_hbm [thread:$0]  %s2864_s23, 128, %s2866_s26, [#allocation4]  }
 0x351   :  { %v2855_v26 = vpop.f32.mrf.mxu2 }
 0x352   :  { %4790 = dma.done.wait [#allocation4], 128  }
 0x353   :  { %4791 = vsyncadd [#allocation4], 4294967168 }
 0x354   :  { %2873 = vsyncpa [#allocation3], 1 }
 0x355   :  { %2874 = vsyncpa [#allocation6], 1 }
 0x356   :  { %2875 = vsyncpa [#allocation9], 1 }
 0x357   :  { %2876 = vsyncpa [#allocation12], 1 }
 0x358   :  { %2877 = vsyncpa [#allocation4], 1 }

</bundles_post_ra>
